<compile_context>
chip_gen: v5e
topology: v5e:2x2
jax: 0.10.0
libtpu: 0.0.40
codegen_flags: <defaults>
</compile_context>

<pallas_src>
import functools
import math

import jax
import jax.numpy as jnp
from jax.experimental import pallas as pl
from jax.experimental.pallas import tpu as pltpu

NEG_SLOPE = 0.01        # torch.nn.LeakyReLU default
LANE = 128


def _leaky_relu(x):
    return jnp.where(x >= 0, x, NEG_SLOPE * x)


def _round_up(x, m):
    return ((x + m - 1) // m) * m


def _pad2(x, rows, cols):
    return jnp.pad(x, ((0, rows - x.shape[0]), (0, cols - x.shape[1])))


def _vmem_limit_bytes():
    # v5e/v6e: 128 MiB physical -> ask ~110 MiB; v7x: 64 MiB -> ask ~48 MiB.
    # Fall back to a value that is safe on every chip if the query fails.
    try:
        cap = int(pltpu.get_tpu_info().vmem_capacity_bytes)
    except Exception:
        cap = 64 * 1024 * 1024
    return max(32 * 1024 * 1024, min(cap - 16 * 1024 * 1024, 110 * 1024 * 1024))


# ------------------------------ fused kernel -------------------------------- #

def fused_forward_kernel(x_ref, w_in_ref, b_in_ref, ahat_hbm, p_hbm, w1h0_ref,
                         vec_ref, mat_ref, b1h_ref, w2h_ref, b2h_ref,
                         o_ref,
                         ahat_scr, p_scr, dma_sem, x_scr, head_scr,
                         *, n_layers, out_dim):
    """One grid step == one SCTConv layer; in-proj at l==0, MLP head at l==L-1."""
    l = pl.program_id(0)

    # ---- first layer: one-time operator DMA + input projection -------------
    @pl.when(l == 0)
    def _():
        # Bring the two layer-invariant [N,N] bf16 operators into VMEM exactly
        # once (single-buffered scratch; not re-DMA'd or double-buffered).
        cp_a = pltpu.make_async_copy(ahat_hbm, ahat_scr, dma_sem.at[0])
        cp_p = pltpu.make_async_copy(p_hbm, p_scr, dma_sem.at[1])
        cp_a.start()
        cp_p.start()

        # X0 = (X / sqrt(N)) @ W_in + b_in   (1/sqrt(N) pre-folded into W_in)
        x0 = (jnp.dot(x_ref[...], w_in_ref[...],
                      preferred_element_type=jnp.float32) + b_in_ref[...])
        x_scr[...] = x0
        # head accumulator starts with the X0 chunk of mlp1
        head_scr[...] = jnp.dot(x0.astype(jnp.bfloat16), w1h0_ref[...],
                                preferred_element_type=jnp.float32)

        cp_a.wait()
        cp_p.wait()

    h = x_scr[...]                         # [N, HP] f32 (carried layer input)
    vec = vec_ref[0]                       # [4, HP] = (a1 | a2 | b1 | b2/√N)
    a1 = vec[0:1, :]
    a2 = vec[1:2, :]
    b1 = vec[2:3, :]
    b2 = vec[3:4, :]

    # shared attention-logit term: relu(h) . a[:H]  (VPU mul + lane reduce)
    e_common = jnp.sum(jnp.maximum(h, 0.0) * a1, axis=-1, keepdims=True)

    n_rows = h.shape[0]
    m_run = jnp.full((n_rows, 1), -jnp.inf, dtype=jnp.float32)
    den = jnp.zeros((n_rows, 1), dtype=jnp.float32)
    acc = jnp.zeros_like(h)

    def absorb(hk, m_run, den, acc):
        # online softmax over the 6 diffusion branches (identical result; only
        # one [N,HP] branch tensor live at a time)
        e = e_common + jnp.sum(jnp.maximum(hk, 0.0) * a2, axis=-1, keepdims=True)
        m_new = jnp.maximum(m_run, e)
        r = jnp.exp(m_run - m_new)
        w = jnp.exp(e - m_new)
        return m_new, den * r + w, acc * r + w * hk

    # ---- GCN diffusion (order = 3): f <- A_hat @ f ; branch = LeakyReLU(f) --
    f = h
    for _ in range(3):
        f = jnp.dot(ahat_scr[...], f.astype(jnp.bfloat16),
                    preferred_element_type=jnp.float32)
        m_run, den, acc = absorb(_leaky_relu(f), m_run, den, acc)

    # ---- scattering diffusion: fp <- P @ fp ; branches = |P^k h - P^(k+1) h| -
    fp = h
    prev = None
    for _ in range(4):                     # 2**(order-1) = 4 lazy-walk steps
        fp = jnp.dot(p_scr[...], fp.astype(jnp.bfloat16),
                     preferred_element_type=jnp.float32)
        if prev is not None:
            m_run, den, acc = absorb(jnp.abs(prev - fp), m_run, den, acc)
        prev = fp

    # attention-weighted mean over the 6 branches:
    # mean_k(softmax_k * h_k) = (softmax-weighted sum) / 6
    h_prime = acc / (den * 6.0)

    # ---- per-layer MLP (bf16 operands, f32 accumulation).  The post-layer
    # X / sqrt(N) rescale is folded into w2/b2 (LeakyReLU is +homogeneous). ---
    y = jnp.dot(h_prime.astype(jnp.bfloat16), mat_ref[0, 0],
                preferred_element_type=jnp.float32) + b1
    y = _leaky_relu(y)
    y = jnp.dot(y.astype(jnp.bfloat16), mat_ref[0, 1],
                preferred_element_type=jnp.float32) + b2
    y = _leaky_relu(y)

    x_scr[...] = y                         # carry into the next layer
    # accumulate this layer's hidden_states chunk of mlp1 into the head
    head_scr[...] += jnp.dot(y.astype(jnp.bfloat16), mat_ref[0, 2],
                             preferred_element_type=jnp.float32)

    # ---- last layer: MLP head + global min/max rescale ----------------------
    @pl.when(l == n_layers - 1)
    def _():
        yh = _leaky_relu(head_scr[...] + b1h_ref[...])
        yh = jnp.dot(yh, w2h_ref[...],
                     preferred_element_type=jnp.float32) + b2h_ref[...]
        # global min/max rescale; padded lanes masked out of the reductions
        col = jax.lax.broadcasted_iota(jnp.int32, yh.shape, 1)
        valid = col < out_dim
        maxv = jnp.max(jnp.where(valid, yh, -jnp.inf), keepdims=True)   # [1,1]
        minv = jnp.min(jnp.where(valid, yh, jnp.inf), keepdims=True)    # [1,1]
        o_ref[...] = (yh - minv) / (maxv + 1e-6 - minv)


# ------------------------------ forward wrapper ------------------------------ #

def scattering_gnn_forward(X, A, params, *, n_layers, hidden_dim, output_dim):
    assert n_layers >= 1
    N, input_dim = X.shape
    H, L = hidden_dim, n_layers
    HP = _round_up(max(hidden_dim, LANE), LANE)
    FP = _round_up(max(input_dim, LANE), LANE)
    OP = _round_up(max(output_dim, LANE), LANE)
    inv_scale = 1.0 / math.sqrt(N)

    # --- normalized diffusion operators, computed once (parameter-like setup).
    # NOTE: isolated nodes would produce inf exactly like the PyTorch reference.
    A_gcn = A + jnp.eye(N, dtype=jnp.float32)
    d_gcn = jnp.power(jnp.sum(A_gcn, axis=0), -0.5)
    A_hat = (d_gcn[:, None] * A_gcn * d_gcn[None, :]).astype(jnp.bfloat16)
    d_sct = jnp.power(jnp.sum(A, axis=0), -1.0)
    P_op = (0.5 * (jnp.eye(N, dtype=jnp.float32)
                   + A * d_sct[None, :])).astype(jnp.bfloat16)

    # --- parameter packing (once); 1/sqrt(N) folded into W_in and w2/b2 ------
    w_in, b_in = params["in_proj"]
    x_pad = _pad2(X, N, FP)
    w_in_pad = _pad2(w_in * inv_scale, FP, HP)
    b_in_pad = _pad2(b_in, 1, HP)

    convs = params["convs"]
    vec_st = jnp.stack([
        jnp.stack([jnp.pad(p["a"][:H, 0], (0, HP - H)),
                   jnp.pad(p["a"][H:, 0], (0, HP - H)),
                   jnp.pad(p["b1"][0], (0, HP - H)),
                   jnp.pad(p["b2"][0] * inv_scale, (0, HP - H))])
        for p in convs])                                       # [L, 4, HP] f32

    w1h, b1h = params["mlp1"]          # [(1+L)*H, H], [1, H]
    w2h, b2h = params["mlp2"]          # [H, out],     [1, out]
    mat_st = jnp.stack([
        jnp.stack([_pad2(p["w1"], HP, HP),
                   _pad2(p["w2"] * inv_scale, HP, HP),
                   _pad2(w1h[(i + 1) * H:(i + 2) * H, :], HP, HP)])
        for i, p in enumerate(convs)]).astype(jnp.bfloat16)    # [L, 3, HP, HP]
    w1h0 = _pad2(w1h[:H, :], HP, HP).astype(jnp.bfloat16)      # X0 chunk of mlp1

    cparams = pltpu.CompilerParams(dimension_semantics=("arbitrary",),
                                   vmem_limit_bytes=_vmem_limit_bytes())

    out_pad = pl.pallas_call(
        functools.partial(fused_forward_kernel, n_layers=L, out_dim=output_dim),
        grid=(L,),
        in_specs=[
            pl.BlockSpec((N, FP), lambda l: (0, 0)),               # X (resident)
            pl.BlockSpec((FP, HP), lambda l: (0, 0)),              # W_in (pre-scaled)
            pl.BlockSpec((1, HP), lambda l: (0, 0)),               # b_in
            pl.BlockSpec(memory_space=pl.ANY),                     # A_hat (HBM, copied once)
            pl.BlockSpec(memory_space=pl.ANY),                     # P     (HBM, copied once)
            pl.BlockSpec((HP, HP), lambda l: (0, 0)),              # mlp1 X0 chunk
            pl.BlockSpec((1, 4, HP), lambda l: (l, 0, 0)),         # per-layer vectors
            pl.BlockSpec((1, 3, HP, HP), lambda l: (l, 0, 0, 0)),  # per-layer matrices
            pl.BlockSpec((1, HP), lambda l: (0, 0)),               # mlp1 bias
            pl.BlockSpec((HP, OP), lambda l: (0, 0)),              # mlp2 weight
            pl.BlockSpec((1, OP), lambda l: (0, 0)),               # mlp2 bias
        ],
        out_specs=pl.BlockSpec((N, OP), lambda l: (0, 0)),
        out_shape=jax.ShapeDtypeStruct((N, OP), jnp.float32),
        scratch_shapes=[
            pltpu.VMEM((N, N), jnp.bfloat16),    # resident A_hat (single buffer)
            pltpu.VMEM((N, N), jnp.bfloat16),    # resident P     (single buffer)
            pltpu.SemaphoreType.DMA((2,)),
            pltpu.VMEM((N, HP), jnp.float32),    # carried layer input X
            pltpu.VMEM((N, HP), jnp.float32),    # mlp1(hidden_states) accumulator
        ],
        compiler_params=cparams,
    )(x_pad, w_in_pad, b_in_pad, A_hat, P_op, w1h0,
      vec_st, mat_st, _pad2(b1h, 1, HP), _pad2(w2h, HP, OP), _pad2(b2h, 1, OP))

    return out_pad[:, :output_dim]


# ------------------------------ parameter init ------------------------------- #

def _init_linear(key, fan_in, fan_out):
    kw, kb = jax.random.split(key)
    bound = 1.0 / math.sqrt(fan_in)
    w = jax.random.uniform(kw, (fan_in, fan_out), jnp.float32, -bound, bound)
    b = jax.random.uniform(kb, (1, fan_out), jnp.float32, -bound, bound)
    return w, b


def init_params(key, input_dim, hidden_dim, output_dim, n_layers):
    keys = jax.random.split(key, 3 + 3 * n_layers)
    params = {"in_proj": _init_linear(keys[0], input_dim, hidden_dim),
              "convs": []}
    k_idx = 1
    for _ in range(n_layers):
        # torch inits `a` to zeros; small random values exercise the softmax path
        a = 0.1 * jax.random.normal(keys[k_idx], (2 * hidden_dim, 1), jnp.float32)
        w1, b1 = _init_linear(keys[k_idx + 1], hidden_dim, hidden_dim)
        w2, b2 = _init_linear(keys[k_idx + 2], hidden_dim, hidden_dim)
        params["convs"].append({"a": a, "w1": w1, "b1": b1, "w2": w2, "b2": b2})
        k_idx += 3
    params["mlp1"] = _init_linear(keys[k_idx], hidden_dim * (1 + n_layers), hidden_dim)
    params["mlp2"] = _init_linear(keys[k_idx + 1], hidden_dim, output_dim)
    return params


# ------------------------------------ main ------------------------------------ #

if __name__ == "__main__":
    N, input_dim, hidden_dim, output_dim, n_layers = 16, 8, 32, 4, 2

    key = jax.random.PRNGKey(0)
    k_adj, k_x, k_p = jax.random.split(key, 3)

    # deterministic symmetric adjacency (no self loops) with guaranteed degree > 0
    A = (jax.random.uniform(k_adj, (N, N)) < 0.3).astype(jnp.float32)
    A = jnp.maximum(A, A.T)
    A = A * (1.0 - jnp.eye(N, dtype=jnp.float32))
    ring = jnp.roll(jnp.eye(N, dtype=jnp.float32), 1, axis=1)
    A = jnp.maximum(A, jnp.maximum(ring, ring.T))

    X = jax.random.normal(k_x, (N, input_dim), dtype=jnp.float32)

    params = init_params(k_p, input_dim, hidden_dim, output_dim, n_layers)

    out = scattering_gnn_forward(X, A, params,
                                 n_layers=n_layers,
                                 hidden_dim=hidden_dim,
                                 output_dim=output_dim)
    out = jax.block_until_ready(out)
    assert out.shape == (N, output_dim), out.shape
    assert bool(jnp.all(jnp.isfinite(out)))
    print("KERNEL_OK")
</pallas_src>

<mosaic_0001>
module attributes {stable_mosaic.version = 11 : i64} {
  func.func @fused_forward_kernel(%arg0: i32, %arg1: memref<16x128xf32, #tpu.memory_space<vmem>>, %arg2: memref<128x128xf32, #tpu.memory_space<vmem>>, %arg3: memref<1x128xf32, #tpu.memory_space<vmem>>, %arg4: memref<16x16xbf16, #tpu.memory_space<any>>, %arg5: memref<16x16xbf16, #tpu.memory_space<any>>, %arg6: memref<128x128xbf16, #tpu.memory_space<vmem>>, %arg7: memref<1x4x128xf32, #tpu.memory_space<vmem>>, %arg8: memref<1x3x128x128xbf16, #tpu.memory_space<vmem>>, %arg9: memref<1x128xf32, #tpu.memory_space<vmem>>, %arg10: memref<128x128xf32, #tpu.memory_space<vmem>>, %arg11: memref<1x128xf32, #tpu.memory_space<vmem>>, %arg12: memref<16x128xf32, #tpu.memory_space<vmem>>, %arg13: memref<16x16xbf16, #tpu.memory_space<vmem>>, %arg14: memref<16x16xbf16, #tpu.memory_space<vmem>>, %arg15: memref<2x!tpu.dma_semaphore, #tpu.memory_space<semaphore_mem>>, %arg16: memref<16x128xf32, #tpu.memory_space<vmem>>, %arg17: memref<16x128xf32, #tpu.memory_space<vmem>>) attributes {dimension_semantics = [#tpu.dimension_semantics<arbitrary>], iteration_bounds = array<i64: 2>, scalar_prefetch = 0 : i64, scratch_operands = 5 : i64, tpu.core_type = #tpu.core_type<tc>, window_params = [{pipeline_mode = #tpu.pipeline_mode<synchronous>, transform_indices = @transform_0, window_bounds = array<i64: 16, 128>}, {pipeline_mode = #tpu.pipeline_mode<synchronous>, transform_indices = @transform_1, window_bounds = array<i64: 128, 128>}, {pipeline_mode = #tpu.pipeline_mode<synchronous>, transform_indices = @transform_2, window_bounds = array<i64: 1, 128>}, {}, {}, {pipeline_mode = #tpu.pipeline_mode<synchronous>, transform_indices = @transform_5, window_bounds = array<i64: 128, 128>}, {transform_indices = @transform_6, window_bounds = array<i64: 1, 4, 128>}, {transform_indices = @transform_7, window_bounds = array<i64: 1, 3, 128, 128>}, {pipeline_mode = #tpu.pipeline_mode<synchronous>, transform_indices = @transform_8, window_bounds = array<i64: 1, 128>}, {pipeline_mode = #tpu.pipeline_mode<synchronous>, transform_indices = @transform_9, window_bounds = array<i64: 128, 128>}, {pipeline_mode = #tpu.pipeline_mode<synchronous>, transform_indices = @transform_10, window_bounds = array<i64: 1, 128>}, {pipeline_mode = #tpu.pipeline_mode<synchronous>, transform_indices = @transform_11, window_bounds = array<i64: 16, 128>}]} {
    %c0_i32 = arith.constant 0 : i32
    %0 = arith.cmpi eq, %arg0, %c0_i32 : i32
    %1 = arith.extui %0 : i1 to i32
    %c0_i32_0 = arith.constant 0 : i32
    %2 = arith.cmpi ne, %1, %c0_i32_0 : i32
    scf.if %2 {
      %c0_i32_73 = arith.constant 0 : i32
      %212 = tpu.memref_slice %arg15[%c0_i32_73] : memref<2x!tpu.dma_semaphore, #tpu.memory_space<semaphore_mem>> -> memref<1x!tpu.dma_semaphore, #tpu.memory_space<semaphore_mem>>
      %213 = tpu.memref_squeeze %212 : memref<1x!tpu.dma_semaphore, #tpu.memory_space<semaphore_mem>> -> memref<!tpu.dma_semaphore, #tpu.memory_space<semaphore_mem>>
      tpu.enqueue_dma source(%arg4 : memref<16x16xbf16, #tpu.memory_space<any>>) target(%arg13 : memref<16x16xbf16, #tpu.memory_space<vmem>>) target_semaphore(%213 : memref<!tpu.dma_semaphore, #tpu.memory_space<semaphore_mem>>)
      %c1_i32_74 = arith.constant 1 : i32
      %214 = tpu.memref_slice %arg15[%c1_i32_74] : memref<2x!tpu.dma_semaphore, #tpu.memory_space<semaphore_mem>> -> memref<1x!tpu.dma_semaphore, #tpu.memory_space<semaphore_mem>>
      %215 = tpu.memref_squeeze %214 : memref<1x!tpu.dma_semaphore, #tpu.memory_space<semaphore_mem>> -> memref<!tpu.dma_semaphore, #tpu.memory_space<semaphore_mem>>
      tpu.enqueue_dma source(%arg5 : memref<16x16xbf16, #tpu.memory_space<any>>) target(%arg14 : memref<16x16xbf16, #tpu.memory_space<vmem>>) target_semaphore(%215 : memref<!tpu.dma_semaphore, #tpu.memory_space<semaphore_mem>>)
      %c0_75 = arith.constant 0 : index
      %c0_76 = arith.constant 0 : index
      %216 = vector.load %arg1[%c0_75, %c0_76] : memref<16x128xf32, #tpu.memory_space<vmem>>, vector<16x128xf32>
      %c0_77 = arith.constant 0 : index
      %c0_78 = arith.constant 0 : index
      %217 = vector.load %arg2[%c0_77, %c0_78] : memref<128x128xf32, #tpu.memory_space<vmem>>, vector<128x128xf32>
      %cst_79 = arith.constant dense<0.000000e+00> : vector<16x128xf32>
      %218 = tpu.matmul %216, %217, %cst_79 {dimension_numbers = #tpu.dot_dimension_numbers<[1], [0], [0], [1], [0, 0, 1, 1], [], []>} : vector<16x128xf32>, vector<128x128xf32>, vector<16x128xf32> -> vector<16x128xf32>
      %c0_80 = arith.constant 0 : index
      %c0_81 = arith.constant 0 : index
      %219 = vector.load %arg3[%c0_80, %c0_81] : memref<1x128xf32, #tpu.memory_space<vmem>>, vector<1x128xf32>
      %220 = vector.broadcast %219 : vector<1x128xf32> to vector<16x128xf32>
      %221 = arith.addf %218, %220 : vector<16x128xf32>
      %c0_82 = arith.constant 0 : index
      %c0_83 = arith.constant 0 : index
      %222 = vector.load %arg16[%c0_82, %c0_83] : memref<16x128xf32, #tpu.memory_space<vmem>>, vector<16x128xf32>
      tpu.vector_store %arg16[%c0_82, %c0_83], %221 {strides = array<i32>} : memref<16x128xf32, #tpu.memory_space<vmem>>, vector<16x128xf32>,
      %223 = arith.truncf %221 : vector<16x128xf32> to vector<16x128xbf16>
      %c0_84 = arith.constant 0 : index
      %c0_85 = arith.constant 0 : index
      %224 = vector.load %arg6[%c0_84, %c0_85] : memref<128x128xbf16, #tpu.memory_space<vmem>>, vector<128x128xbf16>
      %cst_86 = arith.constant dense<0.000000e+00> : vector<16x128xf32>
      %225 = tpu.matmul %223, %224, %cst_86 {dimension_numbers = #tpu.dot_dimension_numbers<[1], [0], [0], [1], [0, 0, 1, 1], [], []>} : vector<16x128xbf16>, vector<128x128xbf16>, vector<16x128xf32> -> vector<16x128xf32>
      %c0_87 = arith.constant 0 : index
      %c0_88 = arith.constant 0 : index
      %226 = vector.load %arg17[%c0_87, %c0_88] : memref<16x128xf32, #tpu.memory_space<vmem>>, vector<16x128xf32>
      tpu.vector_store %arg17[%c0_87, %c0_88], %225 {strides = array<i32>} : memref<16x128xf32, #tpu.memory_space<vmem>>, vector<16x128xf32>,
      %c0_i32_89 = arith.constant 0 : i32
      %227 = tpu.memref_slice %arg15[%c0_i32_89] : memref<2x!tpu.dma_semaphore, #tpu.memory_space<semaphore_mem>> -> memref<1x!tpu.dma_semaphore, #tpu.memory_space<semaphore_mem>>
      %228 = tpu.memref_squeeze %227 : memref<1x!tpu.dma_semaphore, #tpu.memory_space<semaphore_mem>> -> memref<!tpu.dma_semaphore, #tpu.memory_space<semaphore_mem>>
      tpu.wait_dma2 semaphore(%228 : memref<!tpu.dma_semaphore, #tpu.memory_space<semaphore_mem>>) src(%arg4 : memref<16x16xbf16, #tpu.memory_space<any>>) dst(%arg13 : memref<16x16xbf16, #tpu.memory_space<vmem>>)
      %c1_i32_90 = arith.constant 1 : i32
      %229 = tpu.memref_slice %arg15[%c1_i32_90] : memref<2x!tpu.dma_semaphore, #tpu.memory_space<semaphore_mem>> -> memref<1x!tpu.dma_semaphore, #tpu.memory_space<semaphore_mem>>
      %230 = tpu.memref_squeeze %229 : memref<1x!tpu.dma_semaphore, #tpu.memory_space<semaphore_mem>> -> memref<!tpu.dma_semaphore, #tpu.memory_space<semaphore_mem>>
      tpu.wait_dma2 semaphore(%230 : memref<!tpu.dma_semaphore, #tpu.memory_space<semaphore_mem>>) src(%arg5 : memref<16x16xbf16, #tpu.memory_space<any>>) dst(%arg14 : memref<16x16xbf16, #tpu.memory_space<vmem>>)
    } else {
    }
    %c0 = arith.constant 0 : index
    %c0_1 = arith.constant 0 : index
    %3 = vector.load %arg16[%c0, %c0_1] : memref<16x128xf32, #tpu.memory_space<vmem>>, vector<16x128xf32>
    %c0_2 = arith.constant 0 : index
    %c0_3 = arith.constant 0 : index
    %c0_4 = arith.constant 0 : index
    %4 = vector.load %arg7[%c0_2, %c0_3, %c0_4] : memref<1x4x128xf32, #tpu.memory_space<vmem>>, vector<1x4x128xf32>
    %5 = vector.shape_cast %4 : vector<1x4x128xf32> to vector<4x128xf32>
    %6 = vector.extract_strided_slice %5 {offsets = [0, 0], sizes = [1, 128], strides = [1, 1]} : vector<4x128xf32> to vector<1x128xf32>
    %7 = vector.extract_strided_slice %5 {offsets = [1, 0], sizes = [1, 128], strides = [1, 1]} : vector<4x128xf32> to vector<1x128xf32>
    %8 = vector.extract_strided_slice %5 {offsets = [2, 0], sizes = [1, 128], strides = [1, 1]} : vector<4x128xf32> to vector<1x128xf32>
    %9 = vector.extract_strided_slice %5 {offsets = [3, 0], sizes = [1, 128], strides = [1, 1]} : vector<4x128xf32> to vector<1x128xf32>
    %cst = arith.constant 0.000000e+00 : f32
    %10 = vector.broadcast %cst : f32 to vector<16x128xf32>
    %11 = arith.maximumf %3, %10 : vector<16x128xf32>
    %12 = vector.broadcast %6 : vector<1x128xf32> to vector<16x128xf32>
    %13 = arith.mulf %11, %12 : vector<16x128xf32>
    %cst_5 = arith.constant dense<0.000000e+00> : vector<16xf32>
    %14 = vector.multi_reduction <add>, %13, %cst_5 [1] : vector<16x128xf32> to vector<16xf32>
    %15 = vector.shape_cast %14 : vector<16xf32> to vector<16x1xf32>
    %cst_6 = arith.constant 0xFF800000 : f32
    %16 = vector.broadcast %cst_6 : f32 to vector<16x1xf32>
    %cst_7 = arith.constant 0.000000e+00 : f32
    %17 = vector.broadcast %cst_7 : f32 to vector<16x1xf32>
    %cst_8 = arith.constant 0.000000e+00 : f32
    %18 = vector.broadcast %cst_8 : f32 to vector<16x128xf32>
    %c0_9 = arith.constant 0 : index
    %c0_10 = arith.constant 0 : index
    %19 = vector.load %arg13[%c0_9, %c0_10] : memref<16x16xbf16, #tpu.memory_space<vmem>>, vector<16x16xbf16>
    %20 = arith.truncf %3 : vector<16x128xf32> to vector<16x128xbf16>
    %cst_11 = arith.constant dense<0.000000e+00> : vector<16x128xf32>
    %21 = tpu.matmul %19, %20, %cst_11 {dimension_numbers = #tpu.dot_dimension_numbers<[1], [0], [0], [1], [0, 0, 1, 1], [], []>} : vector<16x16xbf16>, vector<16x128xbf16>, vector<16x128xf32> -> vector<16x128xf32>
    %cst_12 = arith.constant 0.000000e+00 : f32
    %22 = vector.broadcast %cst_12 : f32 to vector<16x128xf32>
    %23 = arith.cmpf oge, %21, %22 : vector<16x128xf32>
    %cst_13 = arith.constant 0.00999999977 : f32
    %24 = vector.broadcast %cst_13 : f32 to vector<16x128xf32>
    %25 = arith.mulf %24, %21 : vector<16x128xf32>
    %26 = arith.select %23, %21, %25 : vector<16x128xi1>, vector<16x128xf32>
    %cst_14 = arith.constant 0.000000e+00 : f32
    %27 = vector.broadcast %cst_14 : f32 to vector<16x128xf32>
    %28 = arith.maximumf %26, %27 : vector<16x128xf32>
    %29 = vector.broadcast %7 : vector<1x128xf32> to vector<16x128xf32>
    %30 = arith.mulf %28, %29 : vector<16x128xf32>
    %cst_15 = arith.constant dense<0.000000e+00> : vector<16xf32>
    %31 = vector.multi_reduction <add>, %30, %cst_15 [1] : vector<16x128xf32> to vector<16xf32>
    %32 = vector.shape_cast %31 : vector<16xf32> to vector<16x1xf32>
    %33 = arith.addf %15, %32 : vector<16x1xf32>
    %34 = arith.maximumf %16, %33 : vector<16x1xf32>
    %35 = arith.subf %16, %34 : vector<16x1xf32>
    %36 = math.exp %35 : vector<16x1xf32>
    %37 = arith.subf %33, %34 : vector<16x1xf32>
    %38 = math.exp %37 : vector<16x1xf32>
    %39 = arith.mulf %17, %36 : vector<16x1xf32>
    %40 = arith.addf %39, %38 : vector<16x1xf32>
    %41 = vector.broadcast %36 : vector<16x1xf32> to vector<16x128xf32>
    %42 = arith.mulf %18, %41 : vector<16x128xf32>
    %43 = vector.broadcast %38 : vector<16x1xf32> to vector<16x128xf32>
    %44 = arith.mulf %43, %26 : vector<16x128xf32>
    %45 = arith.addf %42, %44 : vector<16x128xf32>
    %c0_16 = arith.constant 0 : index
    %c0_17 = arith.constant 0 : index
    %46 = vector.load %arg13[%c0_16, %c0_17] : memref<16x16xbf16, #tpu.memory_space<vmem>>, vector<16x16xbf16>
    %47 = arith.truncf %21 : vector<16x128xf32> to vector<16x128xbf16>
    %cst_18 = arith.constant dense<0.000000e+00> : vector<16x128xf32>
    %48 = tpu.matmul %46, %47, %cst_18 {dimension_numbers = #tpu.dot_dimension_numbers<[1], [0], [0], [1], [0, 0, 1, 1], [], []>} : vector<16x16xbf16>, vector<16x128xbf16>, vector<16x128xf32> -> vector<16x128xf32>
    %cst_19 = arith.constant 0.000000e+00 : f32
    %49 = vector.broadcast %cst_19 : f32 to vector<16x128xf32>
    %50 = arith.cmpf oge, %48, %49 : vector<16x128xf32>
    %cst_20 = arith.constant 0.00999999977 : f32
    %51 = vector.broadcast %cst_20 : f32 to vector<16x128xf32>
    %52 = arith.mulf %51, %48 : vector<16x128xf32>
    %53 = arith.select %50, %48, %52 : vector<16x128xi1>, vector<16x128xf32>
    %cst_21 = arith.constant 0.000000e+00 : f32
    %54 = vector.broadcast %cst_21 : f32 to vector<16x128xf32>
    %55 = arith.maximumf %53, %54 : vector<16x128xf32>
    %56 = vector.broadcast %7 : vector<1x128xf32> to vector<16x128xf32>
    %57 = arith.mulf %55, %56 : vector<16x128xf32>
    %cst_22 = arith.constant dense<0.000000e+00> : vector<16xf32>
    %58 = vector.multi_reduction <add>, %57, %cst_22 [1] : vector<16x128xf32> to vector<16xf32>
    %59 = vector.shape_cast %58 : vector<16xf32> to vector<16x1xf32>
    %60 = arith.addf %15, %59 : vector<16x1xf32>
    %61 = arith.maximumf %34, %60 : vector<16x1xf32>
    %62 = arith.subf %34, %61 : vector<16x1xf32>
    %63 = math.exp %62 : vector<16x1xf32>
    %64 = arith.subf %60, %61 : vector<16x1xf32>
    %65 = math.exp %64 : vector<16x1xf32>
    %66 = arith.mulf %40, %63 : vector<16x1xf32>
    %67 = arith.addf %66, %65 : vector<16x1xf32>
    %68 = vector.broadcast %63 : vector<16x1xf32> to vector<16x128xf32>
    %69 = arith.mulf %45, %68 : vector<16x128xf32>
    %70 = vector.broadcast %65 : vector<16x1xf32> to vector<16x128xf32>
    %71 = arith.mulf %70, %53 : vector<16x128xf32>
    %72 = arith.addf %69, %71 : vector<16x128xf32>
    %c0_23 = arith.constant 0 : index
    %c0_24 = arith.constant 0 : index
    %73 = vector.load %arg13[%c0_23, %c0_24] : memref<16x16xbf16, #tpu.memory_space<vmem>>, vector<16x16xbf16>
    %74 = arith.truncf %48 : vector<16x128xf32> to vector<16x128xbf16>
    %cst_25 = arith.constant dense<0.000000e+00> : vector<16x128xf32>
    %75 = tpu.matmul %73, %74, %cst_25 {dimension_numbers = #tpu.dot_dimension_numbers<[1], [0], [0], [1], [0, 0, 1, 1], [], []>} : vector<16x16xbf16>, vector<16x128xbf16>, vector<16x128xf32> -> vector<16x128xf32>
    %cst_26 = arith.constant 0.000000e+00 : f32
    %76 = vector.broadcast %cst_26 : f32 to vector<16x128xf32>
    %77 = arith.cmpf oge, %75, %76 : vector<16x128xf32>
    %cst_27 = arith.constant 0.00999999977 : f32
    %78 = vector.broadcast %cst_27 : f32 to vector<16x128xf32>
    %79 = arith.mulf %78, %75 : vector<16x128xf32>
    %80 = arith.select %77, %75, %79 : vector<16x128xi1>, vector<16x128xf32>
    %cst_28 = arith.constant 0.000000e+00 : f32
    %81 = vector.broadcast %cst_28 : f32 to vector<16x128xf32>
    %82 = arith.maximumf %80, %81 : vector<16x128xf32>
    %83 = vector.broadcast %7 : vector<1x128xf32> to vector<16x128xf32>
    %84 = arith.mulf %82, %83 : vector<16x128xf32>
    %cst_29 = arith.constant dense<0.000000e+00> : vector<16xf32>
    %85 = vector.multi_reduction <add>, %84, %cst_29 [1] : vector<16x128xf32> to vector<16xf32>
    %86 = vector.shape_cast %85 : vector<16xf32> to vector<16x1xf32>
    %87 = arith.addf %15, %86 : vector<16x1xf32>
    %88 = arith.maximumf %61, %87 : vector<16x1xf32>
    %89 = arith.subf %61, %88 : vector<16x1xf32>
    %90 = math.exp %89 : vector<16x1xf32>
    %91 = arith.subf %87, %88 : vector<16x1xf32>
    %92 = math.exp %91 : vector<16x1xf32>
    %93 = arith.mulf %67, %90 : vector<16x1xf32>
    %94 = arith.addf %93, %92 : vector<16x1xf32>
    %95 = vector.broadcast %90 : vector<16x1xf32> to vector<16x128xf32>
    %96 = arith.mulf %72, %95 : vector<16x128xf32>
    %97 = vector.broadcast %92 : vector<16x1xf32> to vector<16x128xf32>
    %98 = arith.mulf %97, %80 : vector<16x128xf32>
    %99 = arith.addf %96, %98 : vector<16x128xf32>
    %c0_30 = arith.constant 0 : index
    %c0_31 = arith.constant 0 : index
    %100 = vector.load %arg14[%c0_30, %c0_31] : memref<16x16xbf16, #tpu.memory_space<vmem>>, vector<16x16xbf16>
    %101 = arith.truncf %3 : vector<16x128xf32> to vector<16x128xbf16>
    %cst_32 = arith.constant dense<0.000000e+00> : vector<16x128xf32>
    %102 = tpu.matmul %100, %101, %cst_32 {dimension_numbers = #tpu.dot_dimension_numbers<[1], [0], [0], [1], [0, 0, 1, 1], [], []>} : vector<16x16xbf16>, vector<16x128xbf16>, vector<16x128xf32> -> vector<16x128xf32>
    %c0_33 = arith.constant 0 : index
    %c0_34 = arith.constant 0 : index
    %103 = vector.load %arg14[%c0_33, %c0_34] : memref<16x16xbf16, #tpu.memory_space<vmem>>, vector<16x16xbf16>
    %104 = arith.truncf %102 : vector<16x128xf32> to vector<16x128xbf16>
    %cst_35 = arith.constant dense<0.000000e+00> : vector<16x128xf32>
    %105 = tpu.matmul %103, %104, %cst_35 {dimension_numbers = #tpu.dot_dimension_numbers<[1], [0], [0], [1], [0, 0, 1, 1], [], []>} : vector<16x16xbf16>, vector<16x128xbf16>, vector<16x128xf32> -> vector<16x128xf32>
    %106 = arith.subf %102, %105 : vector<16x128xf32>
    %107 = math.absf %106 : vector<16x128xf32>
    %cst_36 = arith.constant 0.000000e+00 : f32
    %108 = vector.broadcast %cst_36 : f32 to vector<16x128xf32>
    %109 = arith.maximumf %107, %108 : vector<16x128xf32>
    %110 = vector.broadcast %7 : vector<1x128xf32> to vector<16x128xf32>
    %111 = arith.mulf %109, %110 : vector<16x128xf32>
    %cst_37 = arith.constant dense<0.000000e+00> : vector<16xf32>
    %112 = vector.multi_reduction <add>, %111, %cst_37 [1] : vector<16x128xf32> to vector<16xf32>
    %113 = vector.shape_cast %112 : vector<16xf32> to vector<16x1xf32>
    %114 = arith.addf %15, %113 : vector<16x1xf32>
    %115 = arith.maximumf %88, %114 : vector<16x1xf32>
    %116 = arith.subf %88, %115 : vector<16x1xf32>
    %117 = math.exp %116 : vector<16x1xf32>
    %118 = arith.subf %114, %115 : vector<16x1xf32>
    %119 = math.exp %118 : vector<16x1xf32>
    %120 = arith.mulf %94, %117 : vector<16x1xf32>
    %121 = arith.addf %120, %119 : vector<16x1xf32>
    %122 = vector.broadcast %117 : vector<16x1xf32> to vector<16x128xf32>
    %123 = arith.mulf %99, %122 : vector<16x128xf32>
    %124 = vector.broadcast %119 : vector<16x1xf32> to vector<16x128xf32>
    %125 = arith.mulf %124, %107 : vector<16x128xf32>
    %126 = arith.addf %123, %125 : vector<16x128xf32>
    %c0_38 = arith.constant 0 : index
    %c0_39 = arith.constant 0 : index
    %127 = vector.load %arg14[%c0_38, %c0_39] : memref<16x16xbf16, #tpu.memory_space<vmem>>, vector<16x16xbf16>
    %128 = arith.truncf %105 : vector<16x128xf32> to vector<16x128xbf16>
    %cst_40 = arith.constant dense<0.000000e+00> : vector<16x128xf32>
    %129 = tpu.matmul %127, %128, %cst_40 {dimension_numbers = #tpu.dot_dimension_numbers<[1], [0], [0], [1], [0, 0, 1, 1], [], []>} : vector<16x16xbf16>, vector<16x128xbf16>, vector<16x128xf32> -> vector<16x128xf32>
    %130 = arith.subf %105, %129 : vector<16x128xf32>
    %131 = math.absf %130 : vector<16x128xf32>
    %cst_41 = arith.constant 0.000000e+00 : f32
    %132 = vector.broadcast %cst_41 : f32 to vector<16x128xf32>
    %133 = arith.maximumf %131, %132 : vector<16x128xf32>
    %134 = vector.broadcast %7 : vector<1x128xf32> to vector<16x128xf32>
    %135 = arith.mulf %133, %134 : vector<16x128xf32>
    %cst_42 = arith.constant dense<0.000000e+00> : vector<16xf32>
    %136 = vector.multi_reduction <add>, %135, %cst_42 [1] : vector<16x128xf32> to vector<16xf32>
    %137 = vector.shape_cast %136 : vector<16xf32> to vector<16x1xf32>
    %138 = arith.addf %15, %137 : vector<16x1xf32>
    %139 = arith.maximumf %115, %138 : vector<16x1xf32>
    %140 = arith.subf %115, %139 : vector<16x1xf32>
    %141 = math.exp %140 : vector<16x1xf32>
    %142 = arith.subf %138, %139 : vector<16x1xf32>
    %143 = math.exp %142 : vector<16x1xf32>
    %144 = arith.mulf %121, %141 : vector<16x1xf32>
    %145 = arith.addf %144, %143 : vector<16x1xf32>
    %146 = vector.broadcast %141 : vector<16x1xf32> to vector<16x128xf32>
    %147 = arith.mulf %126, %146 : vector<16x128xf32>
    %148 = vector.broadcast %143 : vector<16x1xf32> to vector<16x128xf32>
    %149 = arith.mulf %148, %131 : vector<16x128xf32>
    %150 = arith.addf %147, %149 : vector<16x128xf32>
    %c0_43 = arith.constant 0 : index
    %c0_44 = arith.constant 0 : index
    %151 = vector.load %arg14[%c0_43, %c0_44] : memref<16x16xbf16, #tpu.memory_space<vmem>>, vector<16x16xbf16>
    %152 = arith.truncf %129 : vector<16x128xf32> to vector<16x128xbf16>
    %cst_45 = arith.constant dense<0.000000e+00> : vector<16x128xf32>
    %153 = tpu.matmul %151, %152, %cst_45 {dimension_numbers = #tpu.dot_dimension_numbers<[1], [0], [0], [1], [0, 0, 1, 1], [], []>} : vector<16x16xbf16>, vector<16x128xbf16>, vector<16x128xf32> -> vector<16x128xf32>
    %154 = arith.subf %129, %153 : vector<16x128xf32>
    %155 = math.absf %154 : vector<16x128xf32>
    %cst_46 = arith.constant 0.000000e+00 : f32
    %156 = vector.broadcast %cst_46 : f32 to vector<16x128xf32>
    %157 = arith.maximumf %155, %156 : vector<16x128xf32>
    %158 = vector.broadcast %7 : vector<1x128xf32> to vector<16x128xf32>
    %159 = arith.mulf %157, %158 : vector<16x128xf32>
    %cst_47 = arith.constant dense<0.000000e+00> : vector<16xf32>
    %160 = vector.multi_reduction <add>, %159, %cst_47 [1] : vector<16x128xf32> to vector<16xf32>
    %161 = vector.shape_cast %160 : vector<16xf32> to vector<16x1xf32>
    %162 = arith.addf %15, %161 : vector<16x1xf32>
    %163 = arith.maximumf %139, %162 : vector<16x1xf32>
    %164 = arith.subf %139, %163 : vector<16x1xf32>
    %165 = math.exp %164 : vector<16x1xf32>
    %166 = arith.subf %162, %163 : vector<16x1xf32>
    %167 = math.exp %166 : vector<16x1xf32>
    %168 = arith.mulf %145, %165 : vector<16x1xf32>
    %169 = arith.addf %168, %167 : vector<16x1xf32>
    %170 = vector.broadcast %165 : vector<16x1xf32> to vector<16x128xf32>
    %171 = arith.mulf %150, %170 : vector<16x128xf32>
    %172 = vector.broadcast %167 : vector<16x1xf32> to vector<16x128xf32>
    %173 = arith.mulf %172, %155 : vector<16x128xf32>
    %174 = arith.addf %171, %173 : vector<16x128xf32>
    %cst_48 = arith.constant 6.000000e+00 : f32
    %175 = vector.broadcast %cst_48 : f32 to vector<16x1xf32>
    %176 = arith.mulf %169, %175 : vector<16x1xf32>
    %177 = vector.broadcast %176 : vector<16x1xf32> to vector<16x128xf32>
    %178 = arith.divf %174, %177 : vector<16x128xf32>
    %179 = arith.truncf %178 : vector<16x128xf32> to vector<16x128xbf16>
    %c0_49 = arith.constant 0 : index
    %c0_50 = arith.constant 0 : index
    %c0_51 = arith.constant 0 : index
    %c0_52 = arith.constant 0 : index
    %180 = vector.load %arg8[%c0_49, %c0_50, %c0_51, %c0_52] : memref<1x3x128x128xbf16, #tpu.memory_space<vmem>>, vector<1x1x128x128xbf16>
    %181 = vector.shape_cast %180 : vector<1x1x128x128xbf16> to vector<128x128xbf16>
    %cst_53 = arith.constant dense<0.000000e+00> : vector<16x128xf32>
    %182 = tpu.matmul %179, %181, %cst_53 {dimension_numbers = #tpu.dot_dimension_numbers<[1], [0], [0], [1], [0, 0, 1, 1], [], []>} : vector<16x128xbf16>, vector<128x128xbf16>, vector<16x128xf32> -> vector<16x128xf32>
    %183 = vector.broadcast %8 : vector<1x128xf32> to vector<16x128xf32>
    %184 = arith.addf %182, %183 : vector<16x128xf32>
    %cst_54 = arith.constant 0.000000e+00 : f32
    %185 = vector.broadcast %cst_54 : f32 to vector<16x128xf32>
    %186 = arith.cmpf oge, %184, %185 : vector<16x128xf32>
    %cst_55 = arith.constant 0.00999999977 : f32
    %187 = vector.broadcast %cst_55 : f32 to vector<16x128xf32>
    %188 = arith.mulf %187, %184 : vector<16x128xf32>
    %189 = arith.select %186, %184, %188 : vector<16x128xi1>, vector<16x128xf32>
    %190 = arith.truncf %189 : vector<16x128xf32> to vector<16x128xbf16>
    %c0_56 = arith.constant 0 : index
    %c1 = arith.constant 1 : index
    %c0_57 = arith.constant 0 : index
    %c0_58 = arith.constant 0 : index
    %191 = vector.load %arg8[%c0_56, %c1, %c0_57, %c0_58] : memref<1x3x128x128xbf16, #tpu.memory_space<vmem>>, vector<1x1x128x128xbf16>
    %192 = vector.shape_cast %191 : vector<1x1x128x128xbf16> to vector<128x128xbf16>
    %cst_59 = arith.constant dense<0.000000e+00> : vector<16x128xf32>
    %193 = tpu.matmul %190, %192, %cst_59 {dimension_numbers = #tpu.dot_dimension_numbers<[1], [0], [0], [1], [0, 0, 1, 1], [], []>} : vector<16x128xbf16>, vector<128x128xbf16>, vector<16x128xf32> -> vector<16x128xf32>
    %194 = vector.broadcast %9 : vector<1x128xf32> to vector<16x128xf32>
    %195 = arith.addf %193, %194 : vector<16x128xf32>
    %cst_60 = arith.constant 0.000000e+00 : f32
    %196 = vector.broadcast %cst_60 : f32 to vector<16x128xf32>
    %197 = arith.cmpf oge, %195, %196 : vector<16x128xf32>
    %cst_61 = arith.constant 0.00999999977 : f32
    %198 = vector.broadcast %cst_61 : f32 to vector<16x128xf32>
    %199 = arith.mulf %198, %195 : vector<16x128xf32>
    %200 = arith.select %197, %195, %199 : vector<16x128xi1>, vector<16x128xf32>
    %c0_62 = arith.constant 0 : index
    %c0_63 = arith.constant 0 : index
    %201 = vector.load %arg16[%c0_62, %c0_63] : memref<16x128xf32, #tpu.memory_space<vmem>>, vector<16x128xf32>
    tpu.vector_store %arg16[%c0_62, %c0_63], %200 {strides = array<i32>} : memref<16x128xf32, #tpu.memory_space<vmem>>, vector<16x128xf32>,
    %c0_64 = arith.constant 0 : index
    %c0_65 = arith.constant 0 : index
    %202 = vector.load %arg17[%c0_64, %c0_65] : memref<16x128xf32, #tpu.memory_space<vmem>>, vector<16x128xf32>
    %203 = arith.truncf %200 : vector<16x128xf32> to vector<16x128xbf16>
    %c0_66 = arith.constant 0 : index
    %c2 = arith.constant 2 : index
    %c0_67 = arith.constant 0 : index
    %c0_68 = arith.constant 0 : index
    %204 = vector.load %arg8[%c0_66, %c2, %c0_67, %c0_68] : memref<1x3x128x128xbf16, #tpu.memory_space<vmem>>, vector<1x1x128x128xbf16>
    %205 = vector.shape_cast %204 : vector<1x1x128x128xbf16> to vector<128x128xbf16>
    %cst_69 = arith.constant dense<0.000000e+00> : vector<16x128xf32>
    %206 = tpu.matmul %203, %205, %cst_69 {dimension_numbers = #tpu.dot_dimension_numbers<[1], [0], [0], [1], [0, 0, 1, 1], [], []>} : vector<16x128xbf16>, vector<128x128xbf16>, vector<16x128xf32> -> vector<16x128xf32>
    %207 = arith.addf %202, %206 : vector<16x128xf32>
    %c0_70 = arith.constant 0 : index
    %c0_71 = arith.constant 0 : index
    %208 = vector.load %arg17[%c0_70, %c0_71] : memref<16x128xf32, #tpu.memory_space<vmem>>, vector<16x128xf32>
    tpu.vector_store %arg17[%c0_70, %c0_71], %207 {strides = array<i32>} : memref<16x128xf32, #tpu.memory_space<vmem>>, vector<16x128xf32>,
    %c1_i32 = arith.constant 1 : i32
    %209 = arith.cmpi eq, %arg0, %c1_i32 : i32
    %210 = arith.extui %209 : i1 to i32
    %c0_i32_72 = arith.constant 0 : i32
    %211 = arith.cmpi ne, %210, %c0_i32_72 : i32
    scf.if %211 {
      %c0_73 = arith.constant 0 : index
      %c0_74 = arith.constant 0 : index
      %212 = vector.load %arg17[%c0_73, %c0_74] : memref<16x128xf32, #tpu.memory_space<vmem>>, vector<16x128xf32>
      %c0_75 = arith.constant 0 : index
      %c0_76 = arith.constant 0 : index
      %213 = vector.load %arg9[%c0_75, %c0_76] : memref<1x128xf32, #tpu.memory_space<vmem>>, vector<1x128xf32>
      %214 = vector.broadcast %213 : vector<1x128xf32> to vector<16x128xf32>
      %215 = arith.addf %212, %214 : vector<16x128xf32>
      %cst_77 = arith.constant 0.000000e+00 : f32
      %216 = vector.broadcast %cst_77 : f32 to vector<16x128xf32>
      %217 = arith.cmpf oge, %215, %216 : vector<16x128xf32>
      %cst_78 = arith.constant 0.00999999977 : f32
      %218 = vector.broadcast %cst_78 : f32 to vector<16x128xf32>
      %219 = arith.mulf %218, %215 : vector<16x128xf32>
      %220 = arith.select %217, %215, %219 : vector<16x128xi1>, vector<16x128xf32>
      %c0_79 = arith.constant 0 : index
      %c0_80 = arith.constant 0 : index
      %221 = vector.load %arg10[%c0_79, %c0_80] : memref<128x128xf32, #tpu.memory_space<vmem>>, vector<128x128xf32>
      %cst_81 = arith.constant dense<0.000000e+00> : vector<16x128xf32>
      %222 = tpu.matmul %220, %221, %cst_81 {dimension_numbers = #tpu.dot_dimension_numbers<[1], [0], [0], [1], [0, 0, 1, 1], [], []>} : vector<16x128xf32>, vector<128x128xf32>, vector<16x128xf32> -> vector<16x128xf32>
      %c0_82 = arith.constant 0 : index
      %c0_83 = arith.constant 0 : index
      %223 = vector.load %arg11[%c0_82, %c0_83] : memref<1x128xf32, #tpu.memory_space<vmem>>, vector<1x128xf32>
      %224 = vector.broadcast %223 : vector<1x128xf32> to vector<16x128xf32>
      %225 = arith.addf %222, %224 : vector<16x128xf32>
      %226 = tpu.iota {dimensions = array<i32: 1>} : vector<16x128xi32>
      %c4_i32 = arith.constant 4 : i32
      %227 = vector.broadcast %c4_i32 : i32 to vector<16x128xi32>
      %228 = arith.cmpi slt, %226, %227 : vector<16x128xi32>
      %cst_84 = arith.constant 0xFF800000 : f32
      %229 = vector.broadcast %cst_84 : f32 to vector<16x128xf32>
      %230 = arith.select %228, %225, %229 : vector<16x128xi1>, vector<16x128xf32>
      %231 = vector.shape_cast %230 : vector<16x128xf32> to vector<1x16x128xf32>
      %cst_85 = arith.constant dense<0xFF800000> : vector<1xf32>
      %232 = vector.multi_reduction <maximumf>, %231, %cst_85 [1, 2] : vector<1x16x128xf32> to vector<1xf32>
      %233 = vector.shape_cast %232 : vector<1xf32> to vector<1x1x1xf32>
      %234 = vector.extract %233[0, 0, 0] : f32 from vector<1x1x1xf32>
      %235 = vector.broadcast %234 : f32 to vector<1x1xf32>
      %cst_86 = arith.constant 0x7F800000 : f32
      %236 = vector.broadcast %cst_86 : f32 to vector<16x128xf32>
      %237 = arith.select %228, %225, %236 : vector<16x128xi1>, vector<16x128xf32>
      %238 = vector.shape_cast %237 : vector<16x128xf32> to vector<1x16x128xf32>
      %cst_87 = arith.constant dense<0x7F800000> : vector<1xf32>
      %239 = vector.multi_reduction <minimumf>, %238, %cst_87 [1, 2] : vector<1x16x128xf32> to vector<1xf32>
      %240 = vector.shape_cast %239 : vector<1xf32> to vector<1x1x1xf32>
      %241 = vector.extract %240[0, 0, 0] : f32 from vector<1x1x1xf32>
      %242 = vector.broadcast %241 : f32 to vector<1x1xf32>
      %243 = vector.broadcast %242 : vector<1x1xf32> to vector<16x128xf32>
      %244 = arith.subf %225, %243 : vector<16x128xf32>
      %cst_88 = arith.constant 9.99999997E-7 : f32
      %245 = vector.broadcast %cst_88 : f32 to vector<1x1xf32>
      %246 = arith.addf %235, %245 : vector<1x1xf32>
      %247 = arith.subf %246, %242 : vector<1x1xf32>
      %248 = vector.broadcast %247 : vector<1x1xf32> to vector<16x128xf32>
      %249 = arith.divf %244, %248 : vector<16x128xf32>
      %c0_89 = arith.constant 0 : index
      %c0_90 = arith.constant 0 : index
      %250 = vector.load %arg12[%c0_89, %c0_90] : memref<16x128xf32, #tpu.memory_space<vmem>>, vector<16x128xf32>
      tpu.vector_store %arg12[%c0_89, %c0_90], %249 {strides = array<i32>} : memref<16x128xf32, #tpu.memory_space<vmem>>, vector<16x128xf32>,
    } else {
    }
    return
  }
  func.func @transform_0(%arg0: i32) -> (i32, i32) {
    %c0_i32 = arith.constant 0 : i32
    %c0_i32_0 = arith.constant 0 : i32
    %c0_i32_1 = arith.constant 0 : i32
    return %c0_i32, %c0_i32_0 : i32, i32
  }
  func.func @transform_1(%arg0: i32) -> (i32, i32) {
    %c0_i32 = arith.constant 0 : i32
    %c0_i32_0 = arith.constant 0 : i32
    %c0_i32_1 = arith.constant 0 : i32
    return %c0_i32, %c0_i32_0 : i32, i32
  }
  func.func @transform_2(%arg0: i32) -> (i32, i32) {
    %c0_i32 = arith.constant 0 : i32
    %c0_i32_0 = arith.constant 0 : i32
    %c0_i32_1 = arith.constant 0 : i32
    return %c0_i32, %c0_i32_0 : i32, i32
  }
  func.func @transform_5(%arg0: i32) -> (i32, i32) {
    %c0_i32 = arith.constant 0 : i32
    %c0_i32_0 = arith.constant 0 : i32
    %c0_i32_1 = arith.constant 0 : i32
    return %c0_i32, %c0_i32_0 : i32, i32
  }
  func.func @transform_6(%arg0: i32) -> (i32, i32, i32) {
    %c0_i32 = arith.constant 0 : i32
    %c0_i32_0 = arith.constant 0 : i32
    %c0_i32_1 = arith.constant 0 : i32
    return %arg0, %c0_i32, %c0_i32_0 : i32, i32, i32
  }
  func.func @transform_7(%arg0: i32) -> (i32, i32, i32, i32) {
    %c0_i32 = arith.constant 0 : i32
    %c0_i32_0 = arith.constant 0 : i32
    %c0_i32_1 = arith.constant 0 : i32
    %c0_i32_2 = arith.constant 0 : i32
    return %arg0, %c0_i32, %c0_i32_0, %c0_i32_1 : i32, i32, i32, i32
  }
  func.func @transform_8(%arg0: i32) -> (i32, i32) {
    %c0_i32 = arith.constant 0 : i32
    %c0_i32_0 = arith.constant 0 : i32
    %c0_i32_1 = arith.constant 0 : i32
    return %c0_i32, %c0_i32_0 : i32, i32
  }
  func.func @transform_9(%arg0: i32) -> (i32, i32) {
    %c0_i32 = arith.constant 0 : i32
    %c0_i32_0 = arith.constant 0 : i32
    %c0_i32_1 = arith.constant 0 : i32
    return %c0_i32, %c0_i32_0 : i32, i32
  }
  func.func @transform_10(%arg0: i32) -> (i32, i32) {
    %c0_i32 = arith.constant 0 : i32
    %c0_i32_0 = arith.constant 0 : i32
    %c0_i32_1 = arith.constant 0 : i32
    return %c0_i32, %c0_i32_0 : i32, i32
  }
  func.func @transform_11(%arg0: i32) -> (i32, i32) {
    %c0_i32 = arith.constant 0 : i32
    %c0_i32_0 = arith.constant 0 : i32
    %c0_i32_1 = arith.constant 0 : i32
    return %c0_i32, %c0_i32_0 : i32, i32
  }
}

</mosaic_0001>

<bundles_post_ra>
// kernel: tpu_custom_call.1
= control target key start
LH: loop header
LB: loop body
LE: loop exit
PB: predicated region body
PF: predicated region fallthrough
CT: control target
= control target key end

     0   :  { %s2730_s0 = inlined_call_operand.hbm [shape: f32[16,128], index: 0, kind: input, shape index: {}]   ;;  %s2731_s1 = inlined_call_operand.hbm [shape: f32[128,128], index: 1, kind: input, shape index: {}]   ;;  %s2732_s2 = inlined_call_operand.vmem [shape: f32[1,128], index: 2, kind: input, shape index: {}]   ;;  %s2733_s3 = inlined_call_operand.hbm [shape: bf16[16,16], index: 3, kind: input, shape index: {}]   ;;  %s2734_s4 = inlined_call_operand.hbm [shape: bf16[16,16], index: 4, kind: input, shape index: {}]   ;;  %s2735_s5 = inlined_call_operand.hbm [shape: bf16[128,128], index: 5, kind: input, shape index: {}]   ;;  %s2736_s6 = inlined_call_operand.hbm [shape: f32[2,4,128], index: 6, kind: input, shape index: {}]   ;;  %s2737_s7 = inlined_call_operand.hbm [shape: bf16[2,3,128,128], index: 7, kind: input, shape index: {}]   ;;  %s2738_s8 = inlined_call_operand.vmem [shape: f32[1,128], index: 8, kind: input, shape index: {}]   ;;  %s2739_s9 = inlined_call_operand.hbm [shape: f32[128,128], index: 9, kind: input, shape index: {}]   ;;  %s2740_s10 = inlined_call_operand.vmem [shape: f32[1,128], index: 10, kind: input, shape index: {}]   ;;  %s2741_s11 = inlined_call_operand.hbm [shape: f32[16,128], index: 11, kind: output, shape index: {}]  }
   0x1   :  { %2749 = sst [smem:[#allocation35_spill]] %s2731_s1 }
   0x2   :  { %2750 = sst [smem:[#allocation36_spill]] %s2738_s8 }
   0x3   :  { %2751 = sst [smem:[#allocation37_spill]] %s2740_s10 }
   0x4   :  { %2752 = sst [smem:[#allocation38_spill]] %s2741_s11 }
   0x5   :  { %16 = vsyncpa [#allocation8], 0 }
   0x6   :  { %17 = vsyncpa [#allocation11], 0 }
   0x7   :  { %18 = vsyncpa [#allocation14], 0 }
   0x8   :  { %20 = vsyncpa [#allocation14 + $0x1], 0 }
   0x9   :  { %21 = vsyncpa [#allocation17], 0 }
   0xa   :  { %22 = vsyncpa [#allocation9], 0  ;;  %s2334_s17 = smov 0   ;;  %s2336_s18 = smov 0  }
   0xb   :  { %s2338_s19 = smov 0   ;;  %s2340_s20 = smov 0  }
   0xc LB: > { %2753 = sst [smem:[#allocation32_spill]] %s2255_s19  ;;  %s2353_s21 = sadd.s32 4294967295, %s2259_s20   ;;  %s2259_s20 = sphi %s2340_s20, %s2767_s20   ;;  %s2255_s19 = sphi %s2338_s19, %s2769_s19   ;;  %s2251_s18 = sphi %s2336_s18, %s2771_s18   ;;  %s2247_s17 = sphi %s2334_s17, %s2770_s17  }
   0xd   : > { %p1521_p0 = scmp.ge.s32.totalorder %s2259_s20, 1  ;;  %p133_p1 = scmp.eq.s32.totalorder %s2353_s21, 0 }
   0xe   : > { %p253_p2 = scmp.lt.s32.totalorder %s2259_s20, 3  ;;  %p1522_p3 = scmp.ne.s32.totalorder %s2353_s21, 0 }
   0xf   : > { %s2754_s1 = sld [smem:[#allocation35_spill]]  ;;  %s2261_s26 = smov [#allocation10]  }
  0x10   : > { %p2362_p4 = pnand %p1521_p0, %p253_p2  ;;  %s280_s27 = sshll.u32 %s2261_s26, 4  ;;  %s281_s27 = int_to_ptr.vmem [resolvable:$true] %s280_s27 }
  0x11   : > { %s2742_s29 = smov 128   ;;  %s2744_s30 = smov 8  }
  0x12   : > { %p1816_p5 = pneg %p2362_p4  ;;  %s2380_s12 = sadd.s32 1, %s2259_s20  }
  0x13   : > { %2757 = sst [smem:[#allocation33_spill]] %s2380_s12  ;;  %s116_s13 = ssub.s32 %s2259_s20, %s2380_s12 }
  0x14   : > { %p2370_p6 = pnand %p1816_p5, %p133_p1  ;;  %s119_s14 = sadd.s32 1, %s2255_s19 }
  0x15   : > { %s278_s24 = sshll.u32 %s2754_s1, 4  ;;  %p117_p7 = scmp.eq.s32.totalorder %s116_s13, 0  ;;  %s279_s24 = int_to_ptr.hbm [resolvable:$true] %s278_s24 }
  0x16   : > { %1822 = dma.hbm_to_vmem [thread:$0]  (!%p2370_p6), %s279_s24, 2048, %s281_s27, [#allocation11], %s2742_s29, %s2742_s29, %s2744_s30  }
  0x17   : > { %p126_p8 = scmp.ne.s32.totalorder %s2255_s19, %s2251_s18  ;;  %p127_p9 = scmp.eq.s32.totalorder %s2259_s20, 0 }
  0x18   : > { %p132_p10 = scmp.ne.s32.totalorder %s2251_s18, %s2247_s17  ;;  %p1840_p13 = scmp.lt.s32.totalorder %s2259_s20, 2 }
  0x19   : > { %s2390_s15 = scalar_select %p117_p7, %s2255_s19, %s119_s14  }
  0x1a   : > { %p2392_p11 = por %p127_p9, %p126_p8  ;;  %p2398_p12 = por %p133_p1, %p132_p10 }
  0x1b   : > { %2758 = sst [smem:[#allocation34_spill]] %s2390_s15  ;;  %s331_s23 = sand.u32 1, %s2259_s20  }
  0x1c   : > { %s333_s24 = sand.u32 1, %s2255_s19   ;;  %s1528_s27 = sshll.u32 %s2259_s20, 2 }
  0x1d   : > { %s1527_s26 = sshll.u32 %s333_s24, 2  ;;  %s339_s17 = scalar_lea.hbm %s2736_s6, %s1528_s27 }
  0x1e   : > { %s341_s14 = sshll.u32 %s339_s17, 4  ;;  %s335_s30 = scalar_lea.vmem [#allocation13], %s1527_s26  ;;  %s342_s14 = int_to_ptr.hbm [resolvable:$true] %s341_s14 }
  0x1f   : > { %s343_s1 = sshll.u32 %s335_s30, 4  ;;  %p2411_p0 = pnand %p1840_p13, %p2392_p11  ;;  %s344_s1 = int_to_ptr.vmem [resolvable:$true] %s343_s1 }
  0x20   : > { %s1785_s12 = smul.u32 192, %s333_s24  ;;  %s264_s10 = sshll.u32 %s2730_s0, 4  ;;  %s265_s10 = int_to_ptr.hbm [resolvable:$true] %s264_s10 }
  0x21   : > { %s2418_s8 = scalar_lea.sflag [#allocation14], %s331_s23  ;;  %s1979_s29 = sshra.s32 %s342_s14, 4  ;;  %s1980_s29 = int_to_ptr.hbm [resolvable:$true] %s1979_s29 }
  0x22   : > { %s1981_s26 = scalar_lea.hbm %s1980_s29, 4  ;;  %p1983_p5 = pneg %p2411_p0 }
  0x23   : > { %p1982_p2 = scmp.ne.s32.totalorder %s1980_s29, %s1981_s26  ;;  %s1986_s24 = scalar_lea.hbm %s2736_s6, 8 }
  0x24   : > { %p1987_p9 = scmp.lt.s32.totalorder %s1980_s29, %s2736_s6  ;;  %p1988_p10 = scmp.lt.s32.totalorder %s1986_s24, %s1981_s26 }
  0x25   : > { %p1984_p7 = pnand %p1983_p5, %p1982_p2 }
  0x26   : > { %p1989_p11 = por %p1988_p10, %p1987_p9 }
  0x27   : > { %p1985_p8 = pneg %p1984_p7 }
  0x29   : > { %p1990_p13 = pnand %p1989_p11, %p1985_p8 }
  0x2b   : > { %1993 = shalt.err (!%p1990_p13)
}
  0x2c   : > { %1832 = dma.hbm_to_vmem [thread:$0]  (!%p2411_p0), %s342_s14, 64, %s344_s1, %s2418_s8  }
  0x2d   : > { %s354_s11 = scalar_lea.vmem [#allocation15], %s1785_s12  ;;  %s2264_s23 = smov [#allocation7]  }
  0x2e   : > { %s2434_s19 = sshll.u32 %s354_s11, 4  ;;  %s266_s17 = sshll.u32 %s2264_s23, 4  ;;  %s267_s17 = int_to_ptr.vmem [resolvable:$true] %s266_s17  ;;  %s363_s19 = int_to_ptr.vmem [resolvable:$true] %s2434_s19 }
  0x2f   : > { %s295_s26 = sshll.u32 %s2735_s5, 4  ;;  %s2762_s16 = smov 8   ;;  %s296_s26 = int_to_ptr.hbm [resolvable:$true] %s295_s26 }
  0x30   : > { %s2763_s24 = smov 128   ;;  %s2265_s1 = smov [#allocation12]  }
  0x31   : > { %1819 = dma.hbm_to_vmem [thread:$0]  (!%p2370_p6), %s265_s10, 256, %s267_s17, [#allocation8], %s2763_s24, %s2763_s24, %s2762_s16  }
  0x32   : > { %s297_s12 = sshll.u32 %s2265_s1, 4  ;;  %s2266_s14 = smov 64   ;;  %s298_s12 = int_to_ptr.vmem [resolvable:$true] %s297_s12 }
  0x33   : > { %s2267_s27 = smov 4   ;;  %s312_s23 = sshll.u32 %s2739_s9, 4  ;;  %s313_s23 = int_to_ptr.hbm [resolvable:$true] %s312_s23 }
  0x34   : > { %1825 = dma.hbm_to_vmem [thread:$0]  (!%p2370_p6), %s296_s26, 1024, %s298_s12, [#allocation11], %s2266_s14, %s2266_s14, %s2267_s27  }
  0x35   : > { %s2268_s30 = smov [#allocation16]   ;;  %s1786_s10 = smul.u32 192, %s2259_s20 }
  0x36   : > { %s314_s29 = sshll.u32 %s2268_s30, 4  ;;  %s2106_s30 = scalar_lea.hbm %s2737_s7, 384  ;;  %s315_s29 = int_to_ptr.vmem [resolvable:$true] %s314_s29 }
  0x37   : > { %1828 = dma.hbm_to_vmem [thread:$0]  (!%p2370_p6), %s313_s23, 2048, %s315_s29, [#allocation17], %s2763_s24, %s2763_s24, %s2762_s16  }
  0x38   : > { %s359_s26 = scalar_lea.hbm %s2737_s7, %s1786_s10 }
  0x39   : > { %s360_s12 = sshll.u32 %s359_s26, 4  ;;  %s361_s12 = int_to_ptr.hbm [resolvable:$true] %s360_s12 }
  0x3a   : > { %s2099_s13 = sshra.s32 %s361_s12, 4  ;;  %s2100_s13 = int_to_ptr.hbm [resolvable:$true] %s2099_s13 }
  0x3b   : > { %s2101_s11 = scalar_lea.hbm %s2100_s13, 192  ;;  %p2107_p6 = scmp.lt.s32.totalorder %s2100_s13, %s2737_s7 }
  0x3c   : > { %p2102_p2 = scmp.ne.s32.totalorder %s2100_s13, %s2101_s11  ;;  %p2108_p9 = scmp.lt.s32.totalorder %s2106_s30, %s2101_s11 }
  0x3e   : > { %p2104_p7 = pnand %p2102_p2, %p1983_p5  ;;  %p2109_p10 = por %p2108_p9, %p2107_p6 }
  0x40   : > { %p2105_p8 = pneg %p2104_p7 }
  0x42   : > { %p2110_p11 = pnand %p2109_p10, %p2105_p8 }
  0x44   : > { %2113 = shalt.err (!%p2110_p11)
}
  0x45   : > { %1835 = dma.hbm_to_vmem [thread:$0]  (!%p2411_p0), %s361_s12, 3072, %s363_s19, %s2418_s8, %s2266_s14, %s2266_s14, %s2267_s27  }
  0x46   : > { %374 = sbr.rel (%p2362_p4) target bundleno = 1942 (0x796), region = 56 }
  0x4b   : > { %2222 = dma.done.wait (%p133_p1), [#allocation8], 256  }
  0x4c   : > { %2224 = vsyncadd (%p133_p1), [#allocation8], 4294967040 }
  0x4d   : > { %2226 = dma.done.wait (%p133_p1), [#allocation11], 3072  }
  0x4e   : > { %2228 = vsyncadd (%p133_p1), [#allocation11], 4294964224  ;;  %s391_s15 = sand.u32 1, %s2353_s21   ;;  %s393_s8 = sand.u32 1, %s2251_s18  }
  0x4f   : > { %s2489_s19 = sshll.u32 %s393_s8, 2  ;;  %s392_s25 = scalar_lea.sflag [#allocation14], %s391_s15 }
  0x50   : > { %s395_s14 = scalar_lea.vmem [#allocation13], %s2489_s19 }
  0x51   : > { %2230 = dma.done.wait (%p2398_p12), %s392_s25, 3136  }
  0x52   : > { %2232 = vsyncadd (%p2398_p12), %s392_s25, 4294964160  ;;  %s1787_s27 = smul.u32 192, %s393_s8 }
  0x54   : > { %s2496_s23 = scalar_lea.vmem [#allocation15], %s1787_s27 }
  0x55   : > { %2234 = dma.done.wait (%p133_p1), [#allocation17], 2048  }
  0x56   : > { %2236 = vsyncadd (%p133_p1), [#allocation17], 4294965248  ;;  %450 = sbr.rel (%p1522_p3) target bundleno = 398 (0x18e), region = 84  ;;  %s458_s1 = sshll.u32 (!%p1522_p3), %s2733_s3, 4  ;;  %s459_s1 = int_to_ptr.hbm [resolvable:$true] %s458_s1 }
  0x57   : > { %s2269_s26 = smov (!%p1522_p3), [#allocation2]   ;;  %s472_s20 = sshll.u32 (!%p1522_p3), %s2734_s4, 4  ;;  %s473_s20 = int_to_ptr.hbm [resolvable:$true] %s472_s20 }
  0x58   : > { %s460_s12 = sshll.u32 (!%p1522_p3), %s2269_s26, 4  ;;  %s2270_s28 = smov (!%p1522_p3), [#allocation3]   ;;  %s461_s12 = int_to_ptr.vmem [resolvable:$true] %s460_s12 }
  0x59   : > { %463 = dma.hbm_to_vmem [thread:$0]  (!%p1522_p3), %s459_s1, 128, %s461_s12, [#allocation4] }
  0x5a   : > { %s474_s30 = sshll.u32 (!%p1522_p3), %s2270_s28, 4  ;;  %s475_s30 = int_to_ptr.vmem [resolvable:$true] %s474_s30 }
  0x5b   : > { %v495_v0 = vld [vmem:[#allocation10 + $0x78] sm:$0xff]  ;;  %v494_v1 = vld [vmem:[#allocation10 + $0x70] sm:$0xff]  ;;  %v493_v2 = vld [vmem:[#allocation10 + $0x68] sm:$0xff]  ;;  %477 = dma.hbm_to_vmem [thread:$0]  %s473_s20, 128, %s475_s30, [#allocation4 + $0x1] }
  0x5c   : > { %1753 = vmatpush.msra.mxu2 %v495_v0  ;;  %500 = vmatpush.msra.mxu0 %v495_v0  ;;  %v492_v3 = vld [vmem:[#allocation10 + $0x60] sm:$0xff]  ;;  %v491_v4 = vld [vmem:[#allocation10 + $0x58] sm:$0xff]  ;;  %v490_v6 = vld [vmem:[#allocation10 + $0x50] sm:$0xff] }
  0x5d   : > { %v1726_v5 = vld [vmem:[#allocation12 + $0x38] sm:$0xff]  ;;  %v1725_v7 = vld [vmem:[#allocation12 + $0x30] sm:$0xff]  ;;  %v489_v8 = vld [vmem:[#allocation10 + $0x48] sm:$0xff] }
  0x5e   : > { %1754 = vmatpush.msra.mxu2 %v494_v1  ;;  %501 = vmatpush.msra.mxu0 %v494_v1  ;;  %v488_v9 = vld [vmem:[#allocation10 + $0x40] sm:$0xff]  ;;  %v1724_v10 = vld [vmem:[#allocation12 + $0x28] sm:$0xff]  ;;  %v487_v11 = vld [vmem:[#allocation10 + $0x38] sm:$0xff] }
  0x5f   : > { %590 = vmatpush.bf16.msra.mxu1 %v1726_v5  ;;  %v486_v12 = vld [vmem:[#allocation10 + $0x30] sm:$0xff]  ;;  %v1723_v13 = vld [vmem:[#allocation12 + $0x20] sm:$0xff]  ;;  %v485_v14 = vld [vmem:[#allocation10 + $0x28] sm:$0xff] }
  0x60   : > { %1755 = vmatpush.msra.mxu2 %v493_v2  ;;  %502 = vmatpush.msra.mxu0 %v493_v2  ;;  %v484_v15 = vld [vmem:[#allocation10 + $0x20] sm:$0xff]  ;;  %v1722_v16 = vld [vmem:[#allocation12 + $0x18] sm:$0xff]  ;;  %v482_v18 = vld [vmem:[#allocation10 + $0x10] sm:$0xff] }
  0x61   : > { %v483_v17 = vld [vmem:[#allocation10 + $0x18] sm:$0xff]  ;;  %v1721_v19 = vld [vmem:[#allocation12 + $0x10] sm:$0xff]  ;;  %v481_v20 = vld [vmem:[#allocation10 + $0x8] sm:$0xff] }
  0x62   : > { %1756 = vmatpush.msra.mxu2 %v492_v3  ;;  %503 = vmatpush.msra.mxu0 %v492_v3  ;;  %v480_v21 = vld [vmem:[#allocation10] sm:$0xff]  ;;  %v479_v22 = vld [vmem:[#allocation7 + $0x8] sm:$0xff]  ;;  %v478_v23 = vld [vmem:[#allocation7] sm:$0xff] }
  0x63   : > { %591 = vmatpush.bf16.msra.mxu1 %v1725_v7  ;;  %v1720_v24 = vld [vmem:[#allocation12 + $0x8] sm:$0xff]  ;;  %v1719_v25 = vld [vmem:[#allocation12] sm:$0xff] }
  0x64   : > { %1757 = vmatpush.msra.mxu2 %v491_v4  ;;  %504 = vmatpush.msra.mxu0 %v491_v4  ;;  %v1892_v26 = vld [vmem:[%s2732_s2] ss:$0 sm:$0xff] }
  0x66   : > { %1758 = vmatpush.msra.mxu2 %v490_v6  ;;  %505 = vmatpush.msra.mxu0 %v490_v6 }
  0x67   : > { %592 = vmatpush.bf16.msra.mxu1 %v1724_v10 }
  0x68   : > { %1759 = vmatpush.msra.mxu2 %v489_v8  ;;  %506 = vmatpush.msra.mxu0 %v489_v8 }
  0x6a   : > { %1760 = vmatpush.msra.mxu2 %v488_v9  ;;  %507 = vmatpush.msra.mxu0 %v488_v9 }
  0x6b   : > { %593 = vmatpush.bf16.msra.mxu1 %v1723_v13 }
  0x6c   : > { %1761 = vmatpush.msra.mxu2 %v487_v11  ;;  %508 = vmatpush.msra.mxu0 %v487_v11 }
  0x6e   : > { %1762 = vmatpush.msra.mxu2 %v486_v12  ;;  %509 = vmatpush.msra.mxu0 %v486_v12 }
  0x6f   : > { %594 = vmatpush.bf16.msra.mxu1 %v1722_v16 }
  0x70   : > { %1763 = vmatpush.msra.mxu2 %v485_v14  ;;  %510 = vmatpush.msra.mxu0 %v485_v14 }
  0x72   : > { %1764 = vmatpush.msra.mxu2 %v484_v15  ;;  %511 = vmatpush.msra.mxu0 %v484_v15 }
  0x73   : > { %595 = vmatpush.bf16.msra.mxu1 %v1721_v19 }
  0x74   : > { %1765 = vmatpush.msra.mxu2 %v483_v17  ;;  %512 = vmatpush.msra.mxu0 %v483_v17 }
  0x76   : > { %1766 = vmatpush.msra.mxu2 %v482_v18  ;;  %513 = vmatpush.msra.mxu0 %v482_v18 }
  0x77   : > { %596 = vmatpush.bf16.msra.mxu1 %v1720_v24 }
  0x78   : > { %1767 = vmatpush.msra.mxu2 %v481_v20  ;;  %514 = vmatpush.msra.mxu0 %v481_v20 }
  0x7a   : > { %1768 = vmatpush.msra.mxu2 %v480_v21  ;;  %515 = vmatpush.msra.mxu0 %v480_v21 }
  0x7b   : > { %519 = vmatmul.f32.vlgmr.msra.gmra.mxu2 %v479_v22  ;;  %516 = vmatmul.f32.vlgmr.msra.gmra.mxu0 %v478_v23 }
  0x7c   : > { %597 = vmatpush.bf16.msra.mxu1 %v1719_v25 }
  0xf8   : > { %v517_v27 = vpop.f32.mrf.mxu0 }
  0xf9   : > { %v518_v28 = vadd.f32 %v1892_v26, %v517_v27 }
  0xfb   : > { %523 = vst [vmem:[#allocation5] sm:$0xff] %v518_v28 }
  0xfe   : > { %v520_v29 = vpop.f32.mrf.mxu2 }
  0xff   : > { %v521_v30 = vadd.f32 %v1892_v26, %v520_v29 }
 0x101   : > { %524 = vst [vmem:[#allocation5 + $0x8] sm:$0xff] %v521_v30  ;;  %v525_v31 = vpack.c.bf16 %v521_v30, %v518_v28 }
 0x103   : > { %598 = vmatmul.bf16.vlgmr.msra.gmra.mxu1 %v525_v31 }
 0x180   : > { %v599_v32 = vpop.f32.mrf.mxu1 }
 0x181   : > { %604 = vst [vmem:[#allocation6 + $0x8] sm:$0xff] %v599_v32 }
 0x188   : > { %v601_v33 = vpop.f32.mrf.mxu1 }
 0x189   : > { %605 = vst [vmem:[#allocation6] sm:$0xff] %v601_v33 }
 0x18a   : > { %2237 = dma.done.wait [#allocation4], 128 }
 0x18b   : > { %2238 = vsyncadd [#allocation4], 4294967168 }
 0x18c   : > { %2239 = dma.done.wait [#allocation4 + $0x1], 128 }
 0x18d   : > { %2240 = vsyncadd [#allocation4 + $0x1], 4294967168 }
 0x18e PF: > { %v612_v34 = vld [vmem:[#allocation5] sm:$0xff]  ;;  %v613_v35 = vld [vmem:[#allocation5 + $0x8] sm:$0xff]  ;;  %v1727_v37 = vld [vmem:[#allocation2] sm:$0xff]  ;;  %vm632_vm0 = vcmask 130048   ;;  %p1712_p1 = scmp.ne.s32.totalorder %s2353_s21, 1 }
 0x18f   : > { %v626_v36 = vpack.c.bf16 %v613_v35, %v612_v34  ;;  %v2513_v38 = vld [vmem:[#allocation3] sm:$0xff]  ;;  %v2520_v39 = vld [vmem:[%s395_s14] sm:$0xf]  ;;  %v615_v40 = vmax.f32 %v612_v34, 0.0  ;;  %v616_v43 = vmax.f32 %v613_v35, 0.0  ;;  %s2764_s15 = sld [smem:[#allocation36_spill]] (!%p1712_p1) }
 0x190   : > { %v617_v41 = vperm.slane %v2520_v39, 0  ;;  %v2524_v48 = vperm.slane %v2520_v39, 1  ;;  %s2765_s25 = sld [smem:[#allocation37_spill]] (!%p1712_p1) }
 0x191   : > { %643 = vmatpush.bf16.msra.mxu2 %v626_v36  ;;  %814 = vmatpush.bf16.msra.mxu3 %v626_v36 }
 0x192   : > { %v618_v42 = vmul.f32 %v617_v41, %v615_v40  ;;  %v619_v44 = vmul.f32 %v617_v41, %v616_v43 }
 0x194   : > { %1573 = vmatmul.msk.bf16.vlgmr.msra.gmra.mxu2 %vm632_vm0, %v1727_v37  ;;  %1580 = vmatmul.msk.bf16.vlgmr.msra.gmra.mxu3 %vm632_vm0, %v2513_v38 }
 0x195   : > { %620 = vadd.xlane.f32.xlu0 %v618_v42 }
 0x19d   : > { %622 = vadd.xlane.f32.xlu0 %v619_v44 }
 0x217   : > { %v645_v45 = vpop.f32.mrf.mxu2  ;;  %v816_v46 = vpop.f32.mrf.mxu3 }
 0x218   : > { %v652_v47 = vmul.f32 0.01, %v645_v45  ;;  %vm650_vm1 = vcmp.ge.f32.partialorder %v645_v45, 0.0 }
 0x21a   : > { %v2526_v49 = vsel %vm650_vm1, %v645_v45, %v652_v47 }
 0x21b   : > { %v656_v50 = vmax.f32 %v2526_v49, 0.0 }
 0x21d   : > { %v659_v51 = vmul.f32 %v2524_v48, %v656_v50 }
 0x21f   : > { %v818_v52 = vpop.f32.mrf.mxu3  ;;  %661 = vadd.xlane.f32.xlu1 %v659_v51  ;;  %v647_v53 = vpop.f32.mrf.mxu2 }
 0x220   : > { %vm651_vm2 = vcmp.ge.f32.partialorder %v647_v53, 0.0  ;;  %v653_v54 = vmul.f32 0.01, %v647_v53  ;;  %v687_v55 = vpack.c.bf16 %v647_v53, %v645_v45  ;;  %v821_v56 = vpack.c.bf16 %v818_v52, %v816_v46 }
 0x222   : > { %695 = vmatpush.bf16.msra.mxu1 %v687_v55  ;;  %829 = vmatpush.bf16.msra.mxu0 %v821_v56  ;;  %v2530_v57 = vsel %vm651_vm2, %v647_v53, %v653_v54 }
 0x223   : > { %v657_v58 = vmax.f32 %v2530_v57, 0.0 }
 0x225   : > { %1574 = vmatmul.msk.bf16.vlgmr.msra.gmra.mxu1 %vm632_vm0, %v1727_v37  ;;  %1581 = vmatmul.msk.bf16.vlgmr.msra.gmra.mxu0 %vm632_vm0, %v2513_v38  ;;  %v660_v59 = vmul.f32 %v2524_v48, %v657_v58 }
 0x227   : > { %663 = vadd.xlane.f32.xlu1 %v660_v59 }
 0x292   : > { %v662_v53 = vpop.xlane.xlu1 %661 }
 0x29a   : > { %v664_v56 = vpop.xlane.xlu1 %663 }
 0x2a2   : > { %v697_v60 = vpop.f32.mrf.mxu1  ;;  %v831_v61 = vpop.f32.mrf.mxu0 }
 0x2a3   : > { %v704_v62 = vmul.f32 0.01, %v697_v60  ;;  %vm702_vm3 = vcmp.ge.f32.partialorder %v697_v60, 0.0  ;;  %v836_v6 = vsub.f32 %v816_v46, %v831_v61 }
 0x2a5   : > { %v2537_v63 = vsel %vm702_vm3, %v697_v60, %v704_v62  ;;  %v2544_v10 = vand.u32 2147483647, %v836_v6 }
 0x2a6   : > { %v708_v0 = vmax.f32 %v2537_v63, 0.0 }
 0x2a7   : > { %v840_v12 = vmax.f32 %v2544_v10, 0.0 }
 0x2a8   : > { %v710_v1 = vmul.f32 %v708_v0, %v2524_v48 }
 0x2a9   : > { %v842_v13 = vmul.f32 %v840_v12, %v2524_v48 }
 0x2aa   : > { %v833_v2 = vpop.f32.mrf.mxu0  ;;  %712 = vadd.xlane.f32.xlu2 %v710_v1  ;;  %v699_v3 = vpop.f32.mrf.mxu1 }
 0x2ab   : > { %vm703_vm4 = vcmp.ge.f32.partialorder %v699_v3, 0.0  ;;  %v705_v4 = vmul.f32 0.01, %v699_v3  ;;  %v742_v5 = vpack.c.bf16 %v699_v3, %v697_v60  ;;  %v874_v7 = vpack.c.bf16 %v833_v2, %v831_v61 }
 0x2ac   : > { %v837_v17 = vsub.f32 %v818_v52, %v833_v2  ;;  %v2582_v52 = vpop.xlane.xlu0 %620 }
 0x2ad   : > { %750 = vmatpush.bf16.msrb.mxu2 %v742_v5  ;;  %v2541_v8 = vsel %vm703_vm4, %v699_v3, %v705_v4  ;;  %882 = vmatpush.bf16.msrb.mxu1 %v874_v7  ;;  %v665_v58 = vadd.f32 %v662_v53, %v2582_v52 }
 0x2ae   : > { %v709_v9 = vmax.f32 %v2541_v8, 0.0  ;;  %v2555_v23 = vand.u32 2147483647, %v837_v17 }
 0x2af   : > { %v667_v62 = vsub.f32 -inf, %v665_v58  ;;  %v673_v3 = vsub.f32 %v665_v58, %v665_v58 }
 0x2b0   : > { %1575 = vmatmul.msk.bf16.vlgmr.msrb.gmra.mxu2 %vm632_vm0, %v1727_v37  ;;  %v711_v11 = vmul.f32 %v709_v9, %v2524_v48  ;;  %1582 = vmatmul.msk.bf16.vlgmr.msrb.gmra.mxu1 %vm632_vm0, %v2513_v38  ;;  %v841_v31 = vmax.f32 %v2555_v23, 0.0 }
 0x2b1   : > { %v669_v5 = vmul.f32 1.442695, %v667_v62  ;;  %v675_v12 = vmul.f32 1.442695, %v673_v3 }
 0x2b2   : > { %714 = vadd.xlane.f32.xlu2 %v711_v11  ;;  %v843_v36 = vmul.f32 %v841_v31, %v2524_v48 }
 0x2b3   : > { %1893 = vpow2.f32 %v669_v5 }
 0x2b4   : > { %v2584_v55 = vpop.xlane.xlu0 %622  ;;  %1895 = vpow2.f32 %v675_v12 }
 0x2b5   : > { %v666_v1 = vadd.f32 %v664_v56, %v2584_v55 }
 0x2b7   : > { %v668_v7 = vsub.f32 -inf, %v666_v1 }
 0x2b9   : > { %v671_v17 = vmul.f32 1.442695, %v668_v7 }
 0x2ba   : > { %844 = vadd.xlane.f32.xlu2 %v842_v13  ;;  %v674_v13 = vsub.f32 %v666_v1, %v666_v1 }
 0x31d   : > { %v713_v54 = vpop.xlane.xlu2 %712 }
 0x31e   : > { %v716_v59 = vadd.f32 %v713_v54, %v2582_v52 }
 0x320   : > { %v718_v0 = vmax.f32 %v665_v58, %v716_v59 }
 0x322   : > { %v720_v6 = vsub.f32 %v665_v58, %v718_v0 }
 0x325   : > { %v715_v60 = vpop.xlane.xlu2 %714 }
 0x32d   : > { %v884_v14 = vpop.f32.mrf.mxu1 }
 0x32e   : > { %v889_v29 = vsub.f32 %v831_v61, %v884_v14 }
 0x330   : > { %v2568_v34 = vand.u32 2147483647, %v889_v29  ;;  %v1894_v29 = vpop.eup %1893 }
 0x332   : > { %v893_v37 = vmax.f32 %v2568_v34, 0.0 }
 0x333   : > { %v752_v15 = vpop.f32.mrf.mxu2 }
 0x334   : > { %vm757_vm5 = vcmp.ge.f32.partialorder %v752_v15, 0.0  ;;  %v759_v16 = vmul.f32 0.01, %v752_v15 }
 0x335   : > { %v886_v19 = vpop.f32.mrf.mxu1 }
 0x336   : > { %v2552_v18 = vsel %vm757_vm5, %v752_v15, %v759_v16  ;;  %v890_v20 = vsub.f32 %v833_v2, %v886_v19  ;;  %v927_v21 = vpack.c.bf16 %v886_v19, %v884_v14  ;;  %v722_v15 = vmul.f32 1.442695, %v720_v6 }
 0x337   : > { %v763_v22 = vmax.f32 %v2552_v18, 0.0  ;;  %v726_v16 = vsub.f32 %v716_v59, %v718_v0 }
 0x338   : > { %v2557_v24 = vand.u32 2147483647, %v890_v20  ;;  %935 = vmatpush.bf16.msra.mxu2 %v927_v21  ;;  %v677_v21 = vmul.f32 1.442695, %v674_v13  ;;  %1897 = vpow2.f32 %v722_v15 }
 0x339   : > { %v765_v25 = vmul.f32 %v763_v22, %v2524_v48  ;;  %v845_v22 = vpop.xlane.xlu2 %844  ;;  %1899 = vpow2.f32 %v671_v17 }
 0x33a   : > { %v894_v27 = vmax.f32 %v2557_v24, 0.0  ;;  %v848_v31 = vadd.f32 %v845_v22, %v2582_v52  ;;  %1901 = vpow2.f32 %v677_v21 }
 0x33b   : > { %v754_v26 = vpop.f32.mrf.mxu2  ;;  %767 = vadd.xlane.f32.xlu0 %v765_v25  ;;  %1583 = vmatmul.msk.bf16.vlgmr.msra.gmra.mxu2 %vm632_vm0, %v2513_v38  ;;  %v895_v38 = vmul.f32 %v893_v37, %v2524_v48 }
 0x33c   : > { %vm758_vm6 = vcmp.ge.f32.partialorder %v754_v26, 0.0  ;;  %v760_v28 = vmul.f32 0.01, %v754_v26  ;;  %v896_v30 = vmul.f32 %v894_v27, %v2524_v48 }
 0x33e   : > { %v2565_v32 = vsel %vm758_vm6, %v754_v26, %v760_v28  ;;  %899 = vadd.xlane.f32.xlu2 %v896_v30  ;;  %v728_v26 = vmul.f32 1.442695, %v726_v16  ;;  %v1734_v16 = vld [vmem:[%s2496_s23 + $0x28] sm:$0xff] }
 0x33f   : > { %v764_v33 = vmax.f32 %v2565_v32, 0.0 }
 0x340   : > { %1903 = vpow2.f32 %v728_v26  ;;  %v1733_v26 = vld [vmem:[%s2496_s23 + $0x20] sm:$0xff] }
 0x341   : > { %v766_v35 = vmul.f32 %v764_v33, %v2524_v48 }
 0x343   : > { %769 = vadd.xlane.f32.xlu1 %v766_v35  ;;  %846 = vadd.xlane.f32.xlu0 %v843_v36 }
 0x34b   : > { %897 = vadd.xlane.f32.xlu1 %v895_v38 }
 0x3ae   : > { %v768_v61 = vpop.xlane.xlu0 %767 }
 0x3af   : > { %v771_v2 = vadd.f32 %v768_v61, %v2582_v52 }
 0x3b1   : > { %v773_v11 = vmax.f32 %v718_v0, %v771_v2 }
 0x3b3   : > { %v775_v20 = vsub.f32 %v718_v0, %v773_v11  ;;  %v781_v36 = vsub.f32 %v771_v2, %v773_v11  ;;  %v850_v37 = vmax.f32 %v773_v11, %v848_v31  ;;  %v1735_v2 = vld [vmem:[%s2496_s23 + $0x30] sm:$0xff] }
 0x3b5   : > { %v777_v33 = vmul.f32 1.442695, %v775_v20  ;;  %v783_v56 = vmul.f32 1.442695, %v781_v36  ;;  %v852_v58 = vsub.f32 %v773_v11, %v850_v37 }
 0x3b6   : > { %v770_v4 = vpop.xlane.xlu1 %769  ;;  %v847_v38 = vpop.xlane.xlu0 %846 }
 0x3b7   : > { %v849_v54 = vadd.f32 %v847_v38, %v2584_v55  ;;  %v854_v7 = vmul.f32 1.442695, %v852_v58 }
 0x3be   : > { %v937_v40 = vpop.f32.mrf.mxu2  ;;  %v898_v28 = vpop.xlane.xlu1 %897 }
 0x3bf   : > { %v942_v41 = vsub.f32 %v884_v14, %v937_v40  ;;  %v772_v14 = vadd.f32 %v770_v4, %v2584_v55  ;;  %v2597_v40 = vadd.f32 %v898_v28, %v2582_v52  ;;  %v858_v4 = vsub.f32 %v848_v31, %v850_v37 }
 0x3c1   : > { %v2574_v42 = vand.u32 2147483647, %v942_v41  ;;  %v2599_v41 = vpop.eup %1895  ;;  %v2610_v59 = vmax.f32 %v850_v37, %v2597_v40 }
 0x3c3   : > { %v946_v43 = vmax.f32 %v2574_v42, 0.0  ;;  %v905_v11 = vsub.f32 %v850_v37, %v2610_v59 }
 0x3c5   : > { %v948_v45 = vmul.f32 %v946_v43, %v2524_v48  ;;  %v2601_v43 = vmul.f32 0.0, %v1894_v29  ;;  %v907_v22 = vmul.f32 1.442695, %v905_v11 }
 0x3c6   : > { %v939_v44 = vpop.f32.mrf.mxu2 }
 0x3c7   : > { %v943_v46 = vsub.f32 %v886_v19, %v939_v44  ;;  %950 = vadd.xlane.f32.xlu0 %v948_v45  ;;  %v2603_v44 = vpop.eup %1897 }
 0x3c9   : > { %v2578_v47 = vand.u32 2147483647, %v943_v46  ;;  %v1736_v46 = vld [vmem:[%s2496_s23 + $0x38] sm:$0xff] }
 0x3ca   : > { %1078 = vmatpush.bf16.msrb.mxu3 %v1736_v46 }
 0x3cb   : > { %v947_v50 = vmax.f32 %v2578_v47, 0.0 }
 0x3cd   : > { %v949_v51 = vmul.f32 %v947_v50, %v2524_v48  ;;  %v717_v48 = vadd.f32 %v715_v60, %v2584_v55  ;;  %v1900_v50 = vpop.eup %1899 }
 0x3ce   : > { %v1902_v60 = vpop.eup %1901  ;;  %1079 = vmatpush.bf16.msrb.mxu3 %v1735_v2 }
 0x3cf   : > { %952 = vadd.xlane.f32.xlu1 %v949_v51  ;;  %v719_v9 = vmax.f32 %v666_v1, %v717_v48  ;;  %v681_v51 = vadd.f32 %v2599_v41, %v2601_v43 }
 0x3d1   : > { %v721_v19 = vsub.f32 %v666_v1, %v719_v9  ;;  %v2592_v25 = vmax.f32 %v719_v9, %v772_v14  ;;  %v727_v30 = vsub.f32 %v717_v48, %v719_v9  ;;  %v732_v61 = vmul.f32 %v2603_v44, %v681_v51  ;;  %v2615_v1 = vpop.eup %1903 }
 0x3d2   : > { %v2617_v48 = vmul.f32 0.0, %v1900_v50  ;;  %1080 = vmatpush.bf16.msrb.mxu3 %v1734_v16 }
 0x3d3   : > { %v724_v27 = vmul.f32 1.442695, %v721_v19  ;;  %v776_v35 = vsub.f32 %v719_v9, %v2592_v25  ;;  %v730_v45 = vmul.f32 1.442695, %v727_v30  ;;  %v782_v62 = vsub.f32 %v772_v14, %v2592_v25  ;;  %v900_v9 = vpop.xlane.xlu2 %899 }
 0x3d4   : > { %v851_v0 = vmax.f32 %v2592_v25, %v849_v54  ;;  %v682_v6 = vadd.f32 %v1902_v60, %v2617_v48  ;;  %v734_v12 = vadd.f32 %v2615_v1, %v732_v61  ;;  %v860_v19 = vmul.f32 1.442695, %v858_v4  ;;  %v1731_v4 = vld [vmem:[%s2496_s23 + $0x10] sm:$0xff] }
 0x3d5   : > { %1905 = vpow2.f32 %v724_v27  ;;  %v779_v53 = vmul.f32 1.442695, %v776_v35  ;;  %v785_v13 = vmul.f32 1.442695, %v782_v62  ;;  %v902_v20 = vadd.f32 %v900_v9, %v2584_v55 }
 0x3d6   : > { %1907 = vpow2.f32 %v777_v33  ;;  %v853_v14 = vsub.f32 %v2592_v25, %v851_v0  ;;  %v859_v29 = vsub.f32 %v849_v54, %v851_v0  ;;  %v911_v33 = vsub.f32 %v2597_v40, %v2610_v59  ;;  %1081 = vmatpush.bf16.msrb.mxu3 %v1733_v26 }
 0x3d7   : > { %1909 = vpow2.f32 %v730_v45  ;;  %v2635_v25 = vmax.f32 %v851_v0, %v902_v20  ;;  %v1732_v45 = vld [vmem:[%s2496_s23 + $0x18] sm:$0xff] }
 0x3d8   : > { %1911 = vpow2.f32 %v779_v53  ;;  %v856_v28 = vmul.f32 1.442695, %v853_v14  ;;  %v862_v46 = vmul.f32 1.442695, %v859_v29  ;;  %v913_v53 = vmul.f32 1.442695, %v911_v33 }
 0x3d9   : > { %1913 = vpow2.f32 %v783_v56  ;;  %v906_v50 = vsub.f32 %v851_v0, %v2635_v25  ;;  %v683_v56 = vmul.f32 %v2599_v41, %v2526_v49  ;;  %v1729_v33 = vld [vmem:[%s2496_s23] sm:$0xff] }
 0x3da   : > { %1915 = vpow2.f32 %v854_v7  ;;  %1082 = vmatpush.bf16.msrb.mxu3 %v1732_v45  ;;  %v912_v7 = vsub.f32 %v902_v20, %v2635_v25 }
 0x3db   : > { %v2620_v3 = vpop.eup %1905  ;;  %1917 = vpow2.f32 %v785_v13 }
 0x3dc   : > { %v2622_v5 = vpop.eup %1907  ;;  %v733_v15 = vmul.f32 %v2620_v3, %v682_v6  ;;  %1919 = vpow2.f32 %v860_v19  ;;  %v909_v6 = vmul.f32 1.442695, %v906_v50  ;;  %v915_v16 = vmul.f32 1.442695, %v912_v7 }
 0x3dd   : > { %v787_v17 = vmul.f32 %v2622_v5, %v734_v12  ;;  %v1910_v21 = vpop.eup %1909  ;;  %1921 = vpow2.f32 %v907_v22  ;;  %v685_v12 = vadd.f32 %v683_v56, %v2601_v43 }
 0x3de   : > { %v2633_v27 = vpop.eup %1911  ;;  %v735_v31 = vadd.f32 %v1910_v21, %v733_v15  ;;  %1923 = vpow2.f32 %v856_v28  ;;  %1083 = vmatpush.bf16.msrb.mxu3 %v1731_v4  ;;  %v1730_v15 = vld [vmem:[%s2496_s23 + $0x8] sm:$0xff]  ;;  %v739_v22 = vmul.f32 %v1910_v21, %v2541_v8 }
 0x3df   : > { %v2637_v30 = vpop.eup %1913  ;;  %1925 = vpow2.f32 %v862_v46  ;;  %v736_v43 = vmul.f32 %v2603_v44, %v685_v12 }
 0x3e0   : > { %v789_v35 = vadd.f32 %v2637_v30, %v787_v17  ;;  %v788_v37 = vmul.f32 %v2633_v27, %v735_v31  ;;  %v2646_v51 = vpop.eup %1915  ;;  %1927 = vpow2.f32 %v913_v53  ;;  %v793_v50 = vmul.f32 %v2637_v30, %v2552_v18 }
 0x3e1   : > { %v1918_v54 = vpop.eup %1917 }
 0x3e2   : > { %v864_v58 = vmul.f32 %v2646_v51, %v789_v35  ;;  %v790_v61 = vadd.f32 %v1918_v54, %v788_v37  ;;  %v2655_v0 = vpop.eup %1919  ;;  %1084 = vmatpush.bf16.msrb.mxu3 %v1730_v15 }
 0x3e3   : > { %v2658_v9 = vpop.eup %1921 }
 0x3e6   : > { %1085 = vmatpush.bf16.msrb.mxu3 %v1729_v33 }
 0x43a   : > { %v951_v36 = vpop.xlane.xlu0 %950 }
 0x43b   : > { %v954_v38 = vadd.f32 %v951_v36, %v2582_v52  ;;  %v684_v52 = vmul.f32 %v1902_v60, %v2530_v57  ;;  %v1924_v57 = vpop.eup %1923  ;;  %v866_v60 = vadd.f32 %v2655_v0, %v864_v58 }
 0x43c   : > { %v865_v14 = vmul.f32 %v1924_v57, %v790_v61 }
 0x43d   : > { %v956_v40 = vmax.f32 %v2610_v59, %v954_v38  ;;  %v686_v13 = vadd.f32 %v684_v52, %v2617_v48  ;;  %v917_v17 = vmul.f32 %v2658_v9, %v866_v60  ;;  %v738_v48 = vmul.f32 %v2615_v1, %v2537_v63  ;;  %v1743_v52 = vld [vmem:[%s2496_s23 + $0x70] sm:$0xff] }
 0x43f   : > { %v958_v62 = vsub.f32 %v2610_v59, %v956_v40  ;;  %v964_v2 = vsub.f32 %v954_v38, %v956_v40  ;;  %v737_v20 = vmul.f32 %v2620_v3, %v686_v13  ;;  %v740_v38 = vadd.f32 %v738_v48, %v736_v43  ;;  %v1744_v40 = vld [vmem:[%s2496_s23 + $0x78] sm:$0xff] }
 0x440   : > { %1165 = vmatpush.bf16.msrb.mxu0 %v1744_v40 }
 0x441   : > { %v960_v49 = vmul.f32 1.442695, %v958_v62  ;;  %v966_v41 = vmul.f32 1.442695, %v964_v2  ;;  %v741_v21 = vadd.f32 %v739_v22, %v737_v20  ;;  %v791_v46 = vmul.f32 %v2622_v5, %v740_v38  ;;  %v1742_v5 = vld [vmem:[%s2496_s23 + $0x68] sm:$0xff] }
 0x442   : > { %v953_v11 = vpop.xlane.xlu1 %952 }
 0x443   : > { %v955_v59 = vadd.f32 %v953_v11, %v2584_v55  ;;  %1929 = vpow2.f32 %v960_v49  ;;  %v1926_v55 = vpop.eup %1925  ;;  %v792_v1 = vmul.f32 %v2633_v27, %v741_v21  ;;  %v1741_v11 = vld [vmem:[%s2496_s23 + $0x60] sm:$0xff] }
 0x444   : > { %1931 = vpow2.f32 %v909_v6  ;;  %v1928_v29 = vpop.eup %1927  ;;  %v867_v31 = vadd.f32 %v1926_v55, %v865_v14  ;;  %1166 = vmatpush.bf16.msrb.mxu0 %v1743_v52  ;;  %v871_v6 = vmul.f32 %v1926_v55, %v2555_v23 }
 0x445   : > { %v957_v19 = vmax.f32 %v2635_v25, %v955_v59  ;;  %1933 = vpow2.f32 %v966_v41  ;;  %v919_v35 = vadd.f32 %v1928_v29, %v917_v17  ;;  %v870_v41 = vmul.f32 %v2655_v0, %v2544_v10 }
 0x446   : > { %1935 = vpow2.f32 %v915_v16  ;;  %v923_v14 = vmul.f32 %v1928_v29, %v2568_v34 }
 0x447   : > { %v959_v26 = vsub.f32 %v2635_v25, %v957_v19  ;;  %v965_v28 = vsub.f32 %v955_v59, %v957_v19  ;;  %v794_v25 = vmul.f32 %v1918_v54, %v2565_v32  ;;  %v795_v32 = vadd.f32 %v793_v50, %v791_v46  ;;  %v1751_v46 = vld [vmem:[%s2496_s23 + $0xb0] sm:$0xff]  ;;  %v1750_v50 = vld [vmem:[%s2496_s23 + $0xa8] sm:$0xff] }
 0x448   : > { %1167 = vmatpush.bf16.msrb.mxu0 %v1742_v5  ;;  %v1748_v5 = vld [vmem:[%s2496_s23 + $0x98] sm:$0xff] }
 0x449   : > { %v962_v36 = vmul.f32 1.442695, %v959_v26  ;;  %v968_v3 = vmul.f32 1.442695, %v965_v28  ;;  %v1930_v8 = vpop.eup %1929  ;;  %v796_v61 = vadd.f32 %v794_v25, %v792_v1  ;;  %v868_v30 = vmul.f32 %v2646_v51, %v795_v32  ;;  %v1738_v1 = vld [vmem:[%s2496_s23 + $0x48] sm:$0xff]  ;;  %v1737_v25 = vld [vmem:[%s2496_s23 + $0x40] sm:$0xff] }
 0x44a   : > { %v1932_v37 = vpop.eup %1931  ;;  %v970_v44 = vmul.f32 %v1930_v8, %v919_v35 }
 0x44b   : > { %1937 = vpow2.f32 %v962_v36  ;;  %v1934_v63 = vpop.eup %1933  ;;  %v918_v45 = vmul.f32 %v1932_v37, %v867_v31  ;;  %v869_v4 = vmul.f32 %v1924_v57, %v796_v61  ;;  %v872_v12 = vadd.f32 %v870_v41, %v868_v30  ;;  %v1745_v30 = vld [vmem:[%s2496_s23 + $0x80] sm:$0xff] }
 0x44c   : > { %v972_v53 = vadd.f32 %v1934_v63, %v970_v44  ;;  %1939 = vpow2.f32 %v968_v3  ;;  %v1936_v56 = vpop.eup %1935  ;;  %1168 = vmatpush.bf16.msrb.mxu0 %v1741_v11  ;;  %v976_v34 = vmul.f32 %v1934_v63, %v2574_v42  ;;  %v1740_v44 = vld [vmem:[%s2496_s23 + $0x58] sm:$0xff]  ;;  %v1739_v63 = vld [vmem:[%s2496_s23 + $0x50] sm:$0xff] }
 0x44d   : > { %v920_v62 = vadd.f32 %v1936_v56, %v918_v45  ;;  %v873_v60 = vadd.f32 %v871_v6, %v869_v4  ;;  %v921_v57 = vmul.f32 %v2658_v9, %v872_v12  ;;  %v924_v16 = vmul.f32 %v1936_v56, %v2557_v24  ;;  %v1752_v45 = vld [vmem:[%s2496_s23 + $0xb8] sm:$0xff]  ;;  %v1747_v4 = vld [vmem:[%s2496_s23 + $0x90] sm:$0xff] }
 0x44e   : > { %v980_v58 = vmul.f32 6.0, %v972_v53  ;;  %1255 = vmatpush.bf16.msra.mxu1 %v1752_v45  ;;  %v1749_v53 = vld [vmem:[%s2496_s23 + $0xa0] sm:$0xff]  ;;  %v1029_v56 = vperm.slane %v2520_v39, 2  ;;  %v1116_v6 = vperm.slane %v2520_v39, 3 }
 0x44f   : > { %v922_v51 = vmul.f32 %v1932_v37, %v873_v60  ;;  %v925_v17 = vadd.f32 %v923_v14, %v921_v57  ;;  %v1187_v57 = vld [vmem:[#allocation6 + $0x8] sm:$0xff] }
 0x450   : > { %1941 = vrcp.f32 %v980_v58  ;;  %v993_v20 = vand.u32 2147483648, %v980_v58  ;;  %vm987_vm8 = vweird.f32 %v980_v58  ;;  %v991_v55 = vand.u32 2147483647, %v980_v58  ;;  %1169 = vmatpush.bf16.msrb.mxu0 %v1740_v44 }
 0x451   : > { %v1938_v27 = vpop.eup %1937  ;;  %v926_v0 = vadd.f32 %v924_v16, %v922_v51  ;;  %v974_v22 = vmul.f32 %v1930_v8, %v925_v17 }
 0x452   : > { %v971_v54 = vmul.f32 %v1938_v27, %v920_v62  ;;  %v1940_v2 = vpop.eup %1939  ;;  %v994_v31 = vor.u32 1.1754944e-38, %v993_v20  ;;  %vm992_vm11 = vcmp.eq.f32.partialorder %v991_v55, 8.507059e+37  ;;  %1256 = vmatpush.bf16.msra.mxu1 %v1751_v46 }
 0x453   : > { %v975_v48 = vmul.f32 %v1938_v27, %v926_v0  ;;  %v977_v9 = vmul.f32 %v1940_v2, %v2578_v47  ;;  %v978_v42 = vadd.f32 %v976_v34, %v974_v22 }
 0x454   : > { %v973_v18 = vadd.f32 %v1940_v2, %v971_v54  ;;  %1170 = vmatpush.bf16.msrb.mxu0 %v1739_v63 }
 0x455   : > { %v979_v3 = vadd.f32 %v977_v9, %v975_v48 }
 0x456   : > { %v981_v7 = vmul.f32 6.0, %v973_v18  ;;  %v1942_v49 = vpop.eup %1941  ;;  %1257 = vmatpush.bf16.msra.mxu1 %v1750_v50  ;;  %v1746_v18 = vld [vmem:[%s2496_s23 + $0x88] sm:$0xff] }
 0x457   : > { %v983_v59 = vmul.f32 %v1942_v49, %v980_v58  ;;  %vm988_vm7 = vweird.f32 %v1942_v49 }
 0x458   : > { %1943 = vrcp.f32 %v981_v7  ;;  %vm989_vm9 = vmor %vm987_vm8, %vm988_vm7  ;;  %v1008_v26 = vand.u32 2147483648, %v981_v7  ;;  %v1006_v24 = vand.u32 2147483647, %v981_v7  ;;  %vm1002_vm12 = vweird.f32 %v981_v7  ;;  %1171 = vmatpush.bf16.msrb.mxu0 %v1738_v1 }
 0x459   : > { %v984_v13 = vsub.f32 1.0, %v983_v59 }
 0x45a   : > { %v1009_v36 = vor.u32 1.1754944e-38, %v1008_v26  ;;  %vm1007_vm14 = vcmp.eq.f32.partialorder %v1006_v24, 8.507059e+37  ;;  %1258 = vmatpush.bf16.msra.mxu1 %v1749_v53 }
 0x45b   : > { %v985_v15 = vmul.f32 %v1942_v49, %v984_v13 }
 0x45c   : > { %1172 = vmatpush.bf16.msrb.mxu0 %v1737_v25 }
 0x45d   : > { %v986_v19 = vadd.f32 %v1942_v49, %v985_v15 }
 0x45e   : > { %v1944_v23 = vpop.eup %1943  ;;  %1259 = vmatpush.bf16.msra.mxu1 %v1748_v5 }
 0x45f   : > { %v998_v10 = vmul.f32 %v1944_v23, %v981_v7  ;;  %v990_v28 = vsel %vm989_vm9, %v1942_v49, %v986_v19  ;;  %vm1003_vm10 = vweird.f32 %v1944_v23 }
 0x460   : > { %v995_v35 = vsel %vm992_vm11, %v994_v31, %v990_v28  ;;  %vm1004_vm13 = vmor %vm1002_vm12, %vm1003_vm10 }
 0x461   : > { %v999_v43 = vsub.f32 1.0, %v998_v10  ;;  %v996_v21 = vmul.f32 %v995_v35, %v978_v42 }
 0x462   : > { %1260 = vmatpush.bf16.msra.mxu1 %v1747_v4 }
 0x463   : > { %v1000_v29 = vmul.f32 %v1944_v23, %v999_v43 }
 0x465   : > { %v1001_v33 = vadd.f32 %v1944_v23, %v1000_v29 }
 0x466   : > { %1261 = vmatpush.bf16.msra.mxu1 %v1746_v18 }
 0x467   : > { %v1005_v47 = vsel %vm1004_vm13, %v1944_v23, %v1001_v33  ;;  %v1188_v23 = vld [vmem:[#allocation6] sm:$0xff] }
 0x468   : > { %v1010_v8 = vsel %vm1007_vm14, %v1009_v36, %v1005_v47 }
 0x469   : > { %v1011_v37 = vmul.f32 %v1010_v8, %v979_v3 }
 0x46a   : > { %1262 = vmatpush.bf16.msra.mxu1 %v1745_v30 }
 0x46b   : > { %v1012_v38 = vpack.c.bf16 %v1011_v37, %v996_v21 }
 0x46d   : > { %1086 = vmatmul.bf16.vlgmr.msrb.gmra.mxu3 %v1012_v38 }
 0x4f0   : > { %v1087_v40 = vpop.f32.mrf.mxu3 }
 0x4f1   : > { %v1088_v58 = vadd.f32 %v1087_v40, %v1029_v56 }
 0x4f3   : > { %v1094_v61 = vmul.f32 0.01, %v1088_v58  ;;  %vm1092_vm15 = vcmp.ge.f32.partialorder %v1088_v58, 0.0 }
 0x4f5   : > { %v1096_v32 = vsel %vm1092_vm15, %v1088_v58, %v1094_v61 }
 0x4f8   : > { %v1089_v52 = vpop.f32.mrf.mxu3 }
 0x4f9   : > { %v1090_v62 = vadd.f32 %v1089_v52, %v1029_v56 }
 0x4fb   : > { %vm1093_vm0 = vcmp.ge.f32.partialorder %v1090_v62, 0.0  ;;  %v1095_v27 = vmul.f32 0.01, %v1090_v62 }
 0x4fd   : > { %v1097_v54 = vsel %vm1093_vm0, %v1090_v62, %v1095_v27 }
 0x4fe   : > { %v1098_v2 = vpack.c.bf16 %v1097_v54, %v1096_v32 }
 0x500   : > { %1173 = vmatmul.bf16.vlgmr.msrb.gmra.mxu0 %v1098_v2 }
 0x57d   : > { %v1174_v7 = vpop.f32.mrf.mxu0 }
 0x57e   : > { %v1175_v49 = vadd.f32 %v1174_v7, %v1116_v6 }
 0x580   : > { %vm1179_vm1 = vcmp.ge.f32.partialorder %v1175_v49, 0.0  ;;  %v1181_v41 = vmul.f32 0.01, %v1175_v49 }
 0x582   : > { %v1183_v11 = vsel %vm1179_vm1, %v1175_v49, %v1181_v41 }
 0x583   : > { %1185 = vst [vmem:[#allocation5] sm:$0xff] %v1183_v11 }
 0x585   : > { %v1176_v60 = vpop.f32.mrf.mxu0 }
 0x586   : > { %v1177_v59 = vadd.f32 %v1176_v60, %v1116_v6 }
 0x588   : > { %vm1180_vm2 = vcmp.ge.f32.partialorder %v1177_v59, 0.0  ;;  %v1182_v12 = vmul.f32 0.01, %v1177_v59 }
 0x58a   : > { %v1184_v13 = vsel %vm1180_vm2, %v1177_v59, %v1182_v12 }
 0x58b   : > { %1186 = vst [vmem:[#allocation5 + $0x8] sm:$0xff] %v1184_v13  ;;  %v1189_v14 = vpack.c.bf16 %v1184_v13, %v1183_v11 }
 0x58d   : > { %1263 = vmatmul.bf16.vlgmr.msra.gmra.mxu1 %v1189_v14 }
 0x60a   : > { %v1264_v51 = vpop.f32.mrf.mxu1 }
 0x60b   : > { %v1269_v15 = vadd.f32 %v1264_v51, %v1187_v57 }
 0x60d   : > { %1271 = vst [vmem:[#allocation6 + $0x8] sm:$0xff] %v1269_v15 }
 0x611   : > { %1276 = sbr.rel (%p1712_p1) target bundleno = 1931 (0x78b), region = 96 }
 0x612   : > { %v1266_v39 = vpop.f32.mrf.mxu1 }
 0x613   : > { %v1270_v16 = vadd.f32 %v1266_v39, %v1188_v23 }
 0x615   : > { %1272 = vst [vmem:[#allocation6] sm:$0xff] %v1270_v16 }
 0x616   : > { %v1306_v17 = vld [vmem:[#allocation16 + $0x78] sm:$0xff]  ;;  %v1305_v19 = vld [vmem:[#allocation16 + $0x70] sm:$0xff]  ;;  %v1304_v10 = vld [vmem:[#allocation16 + $0x68] sm:$0xff]  ;;  %v1334_v38 = vlaneseq }
 0x617   : > { %1311 = vmatpush.msra.mxu0 %v1306_v17  ;;  %1769 = vmatpush.msra.mxu1 %v1306_v17  ;;  %v1303_v0 = vld [vmem:[#allocation16 + $0x60] sm:$0xff]  ;;  %v1302_v20 = vld [vmem:[#allocation16 + $0x58] sm:$0xff]  ;;  %v1301_v22 = vld [vmem:[#allocation16 + $0x50] sm:$0xff] }
 0x618   : > { %v1300_v55 = vld [vmem:[#allocation16 + $0x48] sm:$0xff]  ;;  %v1299_v43 = vld [vmem:[#allocation16 + $0x40] sm:$0xff]  ;;  %v1298_v48 = vld [vmem:[#allocation16 + $0x38] sm:$0xff]  ;;  %v1335_v44 = vand.u32 127, %v1334_v38 }
 0x619   : > { %1312 = vmatpush.msra.mxu0 %v1305_v19  ;;  %1770 = vmatpush.msra.mxu1 %v1305_v19  ;;  %v1297_v34 = vld [vmem:[#allocation16 + $0x30] sm:$0xff]  ;;  %v1945_v9 = vld [vmem:[%s2764_s15] ss:$0 sm:$0xff]  ;;  %v1296_v26 = vld [vmem:[#allocation16 + $0x28] sm:$0xff] }
 0x61a   : > { %v1277_v28 = vld [vmem:[#allocation6 + $0x8] sm:$0xff]  ;;  %v1294_v35 = vld [vmem:[#allocation16 + $0x18] sm:$0xff]  ;;  %v1293_v36 = vld [vmem:[#allocation16 + $0x10] sm:$0xff]  ;;  %vm1336_vm5 = vcmp.lt.s32.totalorder %v1335_v44, 4 }
 0x61b   : > { %1313 = vmatpush.msra.mxu0 %v1304_v10  ;;  %1771 = vmatpush.msra.mxu1 %v1304_v10  ;;  %v1295_v24 = vld [vmem:[#allocation16 + $0x20] sm:$0xff]  ;;  %v1283_v31 = vadd.f32 %v1945_v9, %v1277_v28  ;;  %v1292_v47 = vld [vmem:[#allocation16 + $0x8] sm:$0xff]  ;;  %v1946_v63 = vld [vmem:[%s2765_s25] ss:$0 sm:$0xff] }
 0x61c   : > { %v1278_v29 = vld [vmem:[#allocation6] sm:$0xff]  ;;  %v1291_v8 = vld [vmem:[#allocation16] sm:$0xff] }
 0x61d   : > { %1314 = vmatpush.msra.mxu0 %v1303_v0  ;;  %1772 = vmatpush.msra.mxu1 %v1303_v0  ;;  %v1284_v33 = vadd.f32 %v1945_v9, %v1278_v29  ;;  %v1287_v42 = vmul.f32 0.01, %v1283_v31  ;;  %vm1285_vm3 = vcmp.ge.f32.partialorder %v1283_v31, 0.0 }
 0x61f   : > { %1315 = vmatpush.msra.mxu0 %v1302_v20  ;;  %1773 = vmatpush.msra.mxu1 %v1302_v20  ;;  %v1288_v3 = vmul.f32 0.01, %v1284_v33  ;;  %vm1286_vm4 = vcmp.ge.f32.partialorder %v1284_v33, 0.0  ;;  %v1289_v21 = vsel %vm1285_vm3, %v1283_v31, %v1287_v42 }
 0x621   : > { %1316 = vmatpush.msra.mxu0 %v1301_v22  ;;  %1774 = vmatpush.msra.mxu1 %v1301_v22  ;;  %v1290_v37 = vsel %vm1286_vm4, %v1284_v33, %v1288_v3 }
 0x623   : > { %1317 = vmatpush.msra.mxu0 %v1300_v55  ;;  %1775 = vmatpush.msra.mxu1 %v1300_v55 }
 0x625   : > { %1318 = vmatpush.msra.mxu0 %v1299_v43  ;;  %1776 = vmatpush.msra.mxu1 %v1299_v43 }
 0x627   : > { %1319 = vmatpush.msra.mxu0 %v1298_v48  ;;  %1777 = vmatpush.msra.mxu1 %v1298_v48 }
 0x629   : > { %1320 = vmatpush.msra.mxu0 %v1297_v34  ;;  %1778 = vmatpush.msra.mxu1 %v1297_v34 }
 0x62b   : > { %1321 = vmatpush.msra.mxu0 %v1296_v26  ;;  %1779 = vmatpush.msra.mxu1 %v1296_v26 }
 0x62d   : > { %1322 = vmatpush.msra.mxu0 %v1295_v24  ;;  %1780 = vmatpush.msra.mxu1 %v1295_v24 }
 0x62f   : > { %1323 = vmatpush.msra.mxu0 %v1294_v35  ;;  %1781 = vmatpush.msra.mxu1 %v1294_v35 }
 0x631   : > { %1324 = vmatpush.msra.mxu0 %v1293_v36  ;;  %1782 = vmatpush.msra.mxu1 %v1293_v36 }
 0x633   : > { %1325 = vmatpush.msra.mxu0 %v1292_v47  ;;  %1783 = vmatpush.msra.mxu1 %v1292_v47 }
 0x635   : > { %1326 = vmatpush.msra.mxu0 %v1291_v8  ;;  %1784 = vmatpush.msra.mxu1 %v1291_v8 }
 0x636   : > { %1327 = vmatmul.f32.vlgmr.msra.gmra.mxu0 %v1289_v21  ;;  %1330 = vmatmul.f32.vlgmr.msra.gmra.mxu1 %v1290_v37 }
 0x6b3   : > { %v1328_v1 = vpop.f32.mrf.mxu0  ;;  %v1331_v25 = vpop.f32.mrf.mxu1 }
 0x6b4   : > { %v1329_v45 = vadd.f32 %v1946_v63, %v1328_v1  ;;  %v1332_v46 = vadd.f32 %v1946_v63, %v1331_v25 }
 0x6b6   : > { %v1337_v50 = vsel %vm1336_vm5, %v1329_v45, -inf  ;;  %v1338_v53 = vsel %vm1336_vm5, %v1332_v46, -inf  ;;  %v1350_v56 = vsel %vm1336_vm5, %v1329_v45, inf  ;;  %v1351_v58 = vsel %vm1336_vm5, %v1332_v46, inf }
 0x6b7   : > { %v1339_v40 = vmax.f32 %v1337_v50, %v1338_v53  ;;  %v1352_v52 = vmin.f32 %v1350_v56, %v1351_v58 }
 0x6b9   : > { %1340 = vmax.xlane.f32.xlu0 %v1339_v40 }
 0x6c1   : > { %1353 = vmin.xlane.f32.xlu0 %v1352_v52 }
 0x72c   : > { %v1341_v61 = vpop.xlane.xlu0 %1340 }
 0x72d   : > { %v1342_v62 = vrot.slane %v1341_v61, 4 }
 0x72f   : > { %v1343_v27 = vmax.f32 %v1341_v61, %v1342_v62 }
 0x731   : > { %v1344_v32 = vrot.slane %v1343_v27, 2 }
 0x733   : > { %v1345_v54 = vmax.f32 %v1343_v27, %v1344_v32 }
 0x734   : > { %v1354_v2 = vpop.xlane.xlu0 %1353 }
 0x735   : > { %v1355_v5 = vrot.slane %v1354_v2, 4  ;;  %v1346_v4 = vrot.slane %v1345_v54, 1 }
 0x737   : > { %v1356_v18 = vmin.f32 %v1354_v2, %v1355_v5  ;;  %v1347_v30 = vmax.f32 %v1345_v54, %v1346_v4 }
 0x739   : > { %v1357_v6 = vrot.slane %v1356_v18, 2  ;;  %1788 = vpush %v1347_v30 }
 0x73b   : > { %v1358_v7 = vmin.f32 %v1356_v18, %v1357_v6 }
 0x73d   : > { %v1359_v49 = vrot.slane %v1358_v7, 1 }
 0x73f   : > { %v1360_v41 = vmin.f32 %v1358_v7, %v1359_v49 }
 0x741   : > { %1790 = vpush %v1360_v41 }
 0x76a   : > { %s1789_s14 = spop %1788 }
 0x76b   : > { %v1349_v11 = vstv %s1789_s14 }
 0x76c   : > { %v1365_v60 = vadd.f32 1e-06, %v1349_v11 }
 0x772   : > { %s1791_s27 = spop %1790 }
 0x773   : > { %v1362_v59 = vstv %s1791_s27 }
 0x774   : > { %v1366_v12 = vsub.f32 %v1365_v60, %v1362_v59  ;;  %v1363_v17 = vsub.f32 %v1329_v45, %v1362_v59  ;;  %v1364_v19 = vsub.f32 %v1332_v46, %v1362_v59 }
 0x776   : > { %1947 = vrcp.f32 %v1366_v12  ;;  %v1378_v51 = vand.u32 2147483648, %v1366_v12  ;;  %v1376_v23 = vand.u32 2147483647, %v1366_v12  ;;  %vm1372_vm7 = vweird.f32 %v1366_v12 }
 0x778   : > { %v1379_v16 = vor.u32 1.1754944e-38, %v1378_v51  ;;  %vm1377_vm9 = vcmp.eq.f32.partialorder %v1376_v23, 8.507059e+37 }
 0x77c   : > { %v1948_v13 = vpop.eup %1947 }
 0x77d   : > { %v1368_v14 = vmul.f32 %v1948_v13, %v1366_v12  ;;  %vm1373_vm6 = vweird.f32 %v1948_v13 }
 0x77e   : > { %vm1374_vm8 = vmor %vm1372_vm7, %vm1373_vm6 }
 0x77f   : > { %v1369_v57 = vsub.f32 1.0, %v1368_v14 }
 0x781   : > { %v1370_v15 = vmul.f32 %v1948_v13, %v1369_v57 }
 0x783   : > { %v1371_v39 = vadd.f32 %v1948_v13, %v1370_v15 }
 0x785   : > { %v1375_v10 = vsel %vm1374_vm8, %v1948_v13, %v1371_v39 }
 0x786   : > { %v1380_v0 = vsel %vm1377_vm9, %v1379_v16, %v1375_v10 }
 0x787   : > { %v1381_v20 = vmul.f32 %v1380_v0, %v1363_v17  ;;  %v1382_v22 = vmul.f32 %v1380_v0, %v1364_v19 }
 0x789   : > { %1383 = vst [vmem:[#allocation18] sm:$0xff] %v1381_v20 }
 0x78a   : > { %1384 = vst [vmem:[#allocation18 + $0x8] sm:$0xff] %v1382_v22 }
 0x78b PF: > { %p1845_p3 = scmp.eq.s32.totalorder %s2353_s21, 1  ;;  %s2271_s23 = smov [#allocation18]  }
 0x78c   : > { %s1390_s22 = sshll.u32 %s2271_s23, 4  ;;  %s2766_s17 = sld [smem:[#allocation38_spill]]  ;;  %s1391_s22 = int_to_ptr.vmem [resolvable:$true] %s1390_s22 }
 0x78d   : > { %s2272_s26 = smov 128   ;;  %s2273_s12 = smov 8  }
 0x792   : > { %s1392_s1 = sshll.u32 %s2766_s17, 4  ;;  %s1393_s1 = int_to_ptr.hbm [resolvable:$true] %s1392_s1 }
 0x793   : > { %1813 = dma.vmem_to_hbm [thread:$0]  (%p1845_p3), %s1391_s22, 256, %s1393_s1, [#allocation9], %s2272_s26, %s2272_s26, %s2273_s12  }
 0x794   : > { %2242 = dma.done.wait (%p1845_p3), [#allocation9], 256  }
 0x795   : > { %2244 = vsyncadd (%p1845_p3), [#allocation9], 4294967040 }
 0x796 PF: > { %s2767_s20 = sld [smem:[#allocation33_spill]]  ;;  %s2770_s17 = smov %s2251_s18 }
 0x797   : > { %s2768_s13 = sld [smem:[#allocation32_spill]] }
 0x798   : > { %s2769_s19 = sld [smem:[#allocation34_spill]] }
 0x79c   : > { %p25_p4 = scmp.ge.s32.totalorder %s2767_s20, 4  }
 0x79d   : > { %s2771_s18 = smov %s2768_s13 }
 0x79e   :  { %27 = sbr.rel (!%p25_p4) target bundleno = 12 (0xc), region = 141 }
 0x7a3   :  { %1409 = vsyncpa [#allocation8], 1 }
 0x7a4   :  { %1411 = vsyncpa [#allocation8 + $0x1], 1 }
 0x7a5   :  { %1412 = vsyncpa [#allocation11], 1 }
 0x7a6   :  { %1413 = vsyncpa [#allocation14], 1 }
 0x7a7   :  { %1415 = vsyncpa [#allocation14 + $0x1], 1 }
 0x7a8   :  { %1416 = vsyncpa [#allocation17], 1 }
 0x7a9   :  { %1417 = vsyncpa [#allocation9], 1 }
 0x7aa   :  { %1419 = vsyncpa [#allocation9 + $0x1], 1 }
 0x7ab   :  { %1420 = vsyncmov [#allocation4] }
 0x7ae   :  { %s1421_s21 = vpop.sfrf %1420 }
 0x7af   :  { %p1717_p12 = scmp.ne.s32.totalorder %s1421_s21, 0 }
 0x7b1   :  { %1425 = shalt.err (%p1717_p12)  }
 0x7b2   :  { %1427 = vsyncmov [#allocation4 + $0x1] }
 0x7b5   :  { %s1428_s11 = vpop.sfrf %1427 }
 0x7b6   :  { %p1718_p0 = scmp.ne.s32.totalorder %s1428_s11, 0 }
 0x7b8   :  { %1432 = shalt.err (%p1718_p0)  }

</bundles_post_ra>
